<compile_context>
chip_gen: v7x
topology: tpu7x:2x2x1
jax: 0.10.0
libtpu: 0.0.40
codegen_flags: <defaults>
</compile_context>

<pallas_src>
import functools
import math

import jax
import jax.numpy as jnp
from jax import lax
from jax.experimental import pallas as pl
from jax.experimental.pallas import tpu as pltpu


# ---------------------------------------------------------------------------
# small helpers
# ---------------------------------------------------------------------------

def _full_spec(a):
    nd = a.ndim
    return pl.BlockSpec(a.shape, lambda n, _nd=nd: (0,) * _nd)


def _avg_pool_3x3(x, stride):
    # AvgPool2d(3, stride, padding=1), count_include_pad=True (torch default)
    s = lax.reduce_window(x, 0.0, lax.add, (1, 3, 3, 1), (1, stride, stride, 1),
                          padding=((0, 0), (1, 1), (1, 1), (0, 0)))
    return s / 9.0


def _avg_pool_kxk(x, k):
    # AvgPool2d(k, k) with no padding (avg_down path); sizes here are always divisible.
    s = lax.reduce_window(x, 0.0, lax.add, (1, k, k, 1), (1, k, k, 1), padding="VALID")
    return s / float(k * k)


def _max_pool_3x3_s2(x):
    return lax.reduce_window(x, -jnp.inf, lax.max, (1, 3, 3, 1), (1, 2, 2, 1),
                             padding=((0, 0), (1, 1), (1, 1), (0, 0)))


# ---------------------------------------------------------------------------
# Pallas kernel: dense (1x1 conv / im2col conv) + bias + optional ReLU
# ---------------------------------------------------------------------------

def _dense_kernel(x_ref, w_ref, b_ref, o_ref, *, relu):
    y = jnp.dot(x_ref[0].astype(jnp.float32), w_ref[...],
                preferred_element_type=jnp.float32) + b_ref[...]
    if relu:
        y = jnp.maximum(y, 0.0)
    o_ref[0] = y.astype(o_ref.dtype)


def _dense(x, w, b, relu=True):
    """x: (N, M, K), w: (K, C), b: (C,) or (1, C)  ->  (N, M, C)."""
    N, M, K = x.shape
    C = w.shape[1]
    b2 = b.reshape(1, C)
    kern = functools.partial(_dense_kernel, relu=relu)
    return pl.pallas_call(
        kern,
        out_shape=jax.ShapeDtypeStruct((N, M, C), jnp.float32),
        grid_spec=pltpu.PrefetchScalarGridSpec(
            num_scalar_prefetch=0,
            grid=(N,),
            in_specs=[pl.BlockSpec((1, M, K), lambda n: (n, 0, 0)),
                      pl.BlockSpec((K, C), lambda n: (0, 0)),
                      pl.BlockSpec((1, C), lambda n: (0, 0))],
            out_specs=pl.BlockSpec((1, M, C), lambda n: (n, 0, 0)),
        ),
        compiler_params=pltpu.CompilerParams(dimension_semantics=("parallel",)),
    )(x, w, b2)


@functools.partial(jax.jit, static_argnames=("stride",))
def _conv3x3_bn_relu(x, w, b, *, stride):
    """3x3 conv (pad 1) + folded BN + ReLU, via wrapper im2col + Pallas matmul kernel.
    x: (N, H, W, Cin), w: (3, 3, Cin, Cout) with BN scale already folded, b: (Cout,)."""
    N, H, W, Cin = x.shape
    Cout = w.shape[3]
    xp = jnp.pad(x, ((0, 0), (1, 1), (1, 1), (0, 0)))
    Ho = (H - 1) // stride + 1
    Wo = (W - 1) // stride + 1
    span_h = (Ho - 1) * stride + 1
    span_w = (Wo - 1) * stride + 1
    patches = []
    for dh in range(3):
        for dw in range(3):
            patches.append(xp[:, dh:dh + span_h:stride, dw:dw + span_w:stride, :])
    pmat = jnp.concatenate(patches, axis=-1).reshape(N, Ho * Wo, 9 * Cin)
    wmat = w.reshape(9 * Cin, Cout)
    out = _dense(pmat, wmat, b, relu=True)
    return out.reshape(N, Ho, Wo, Cout)


# ---------------------------------------------------------------------------
# Pallas kernels: ResNeSt bottleneck (radix = 1)
# ---------------------------------------------------------------------------

def _splat_se_project(y, ml, mr, w2_ref, b2_ref, wse1_ref, bse1_ref,
                      wse2_ref, bse2_ref, w3_ref, b3_ref, pad_ref, H, W):
    """SplAtConv2d(radix=1) = 3x3 conv + BN0 + ReLU + SE-style sigmoid gate, then the
    1x1 projection conv (+BN3).  y: (HW, gw) f32.  Returns (HW, Cout) f32 (pre-residual)."""
    HW = H * W
    halo = W + 1
    gwp = pad_ref.shape[1]

    # zero only the halo rows (tiny); done every invocation for megacore safety.
    pad_ref[0:halo, :] = jnp.zeros((halo, gwp), jnp.float32)
    pad_ref[halo + HW:halo + HW + halo, :] = jnp.zeros((halo, gwp), jnp.float32)
    pad_ref[halo:halo + HW, :] = y

    cout2 = w2_ref.shape[3]
    u = jnp.zeros((HW, cout2), jnp.float32)
    for kh in range(3):
        for kw in range(3):
            dh, dw = kh - 1, kw - 1
            off = dh * W + dw
            t = pad_ref[halo + off:halo + off + HW, :]
            if dw == -1:
                t = t * ml          # zero out columns whose left neighbour is out of range
            elif dw == 1:
                t = t * mr
            u = u + jnp.dot(t, w2_ref[kh, kw], preferred_element_type=jnp.float32)
    u = jnp.maximum(u + b2_ref[...], 0.0)                      # (HW, gw)

    # split-attention gate (radix == 1): GAP -> fc1(+BN1)+ReLU -> fc2 -> sigmoid.
    # M=1 "matmuls" are done as VPU/XLU reductions instead of MXU dots.
    pooled = jnp.mean(u, axis=0, keepdims=True)                # (1, gw)
    t1 = jnp.sum(wse1_ref[...] * pooled, axis=1, keepdims=True) + bse1_ref[...]   # (inter, 1)
    t1 = jnp.maximum(t1, 0.0)
    gate = jnp.sum(wse2_ref[...] * t1, axis=0, keepdims=True) + bse2_ref[...]     # (1, gw)
    gate = jax.nn.sigmoid(gate)
    u = u * gate

    # 1x1 projection conv (+ folded BN3)
    return jnp.dot(u, w3_ref[...], preferred_element_type=jnp.float32) + b3_ref[...]


def _block_id_kernel(x_ref, ml_ref, mr_ref, w1_ref, b1_ref, w2_ref, b2_ref,
                     wse1_ref, bse1_ref, wse2_ref, bse2_ref, w3_ref, b3_ref,
                     o_ref, pad_ref, *, H, W):
    x = x_ref[0].astype(jnp.float32)                           # (HW, Cio)
    y = jnp.maximum(jnp.dot(x, w1_ref[...], preferred_element_type=jnp.float32)
                    + b1_ref[...], 0.0)                        # conv1 1x1 + BN + ReLU
    out = _splat_se_project(y, ml_ref[...], mr_ref[...], w2_ref, b2_ref, wse1_ref,
                            bse1_ref, wse2_ref, bse2_ref, w3_ref, b3_ref, pad_ref, H, W)
    o_ref[0] = jnp.maximum(out + x, 0.0).astype(o_ref.dtype)   # identity residual + ReLU


def _block_first_kernel(y_ref, xd_ref, ml_ref, mr_ref, w2_ref, b2_ref,
                        wse1_ref, bse1_ref, wse2_ref, bse2_ref, w3_ref, b3_ref,
                        wd_ref, bd_ref, o_ref, pad_ref, *, H, W):
    y = y_ref[0].astype(jnp.float32)                           # conv1(+avd) output (HW, gw)
    out = _splat_se_project(y, ml_ref[...], mr_ref[...], w2_ref, b2_ref, wse1_ref,
                            bse1_ref, wse2_ref, bse2_ref, w3_ref, b3_ref, pad_ref, H, W)
    res = jnp.dot(xd_ref[0].astype(jnp.float32), wd_ref[...],
                  preferred_element_type=jnp.float32) + bd_ref[...]   # downsample 1x1 + BN
    o_ref[0] = jnp.maximum(out + res, 0.0).astype(o_ref.dtype)


def _edge_masks(H, W):
    w_idx = jnp.arange(H * W, dtype=jnp.int32) % W
    ml = (w_idx > 0).astype(jnp.float32).reshape(H * W, 1)
    mr = (w_idx < W - 1).astype(jnp.float32).reshape(H * W, 1)
    return ml, mr


@jax.jit
def _block_identity(x, p):
    N, H, W, C = x.shape
    gw = p["w1"].shape[1]
    HW = H * W
    x2 = x.reshape(N, HW, C)
    ml, mr = _edge_masks(H, W)
    args = [x2, ml, mr, p["w1"], p["b1"], p["w2"], p["b2"], p["wse1"], p["bse1"],
            p["wse2"], p["bse2"], p["w3"], p["b3"]]
    in_specs = [pl.BlockSpec((1, HW, C), lambda n: (n, 0, 0))]
    in_specs += [_full_spec(a) for a in args[1:]]
    kern = functools.partial(_block_id_kernel, H=H, W=W)
    out = pl.pallas_call(
        kern,
        out_shape=jax.ShapeDtypeStruct((N, HW, C), jnp.float32),
        grid_spec=pltpu.PrefetchScalarGridSpec(
            num_scalar_prefetch=0, grid=(N,),
            in_specs=in_specs,
            out_specs=pl.BlockSpec((1, HW, C), lambda n: (n, 0, 0)),
            scratch_shapes=[pltpu.VMEM((HW + 2 * (W + 1), gw), jnp.float32)]),
        compiler_params=pltpu.CompilerParams(dimension_semantics=("parallel",)),
    )(*args)
    return out.reshape(N, H, W, C)


@functools.partial(jax.jit, static_argnames=("stride",))
def _block_first(x, p, *, stride):
    N, H, W, Cin = x.shape
    gw = p["w1"].shape[1]
    Cout = p["w3"].shape[1]
    # conv1 1x1 + BN + ReLU (Pallas dense kernel)
    y = _dense(x.reshape(N, H * W, Cin), p["w1"], p["b1"], relu=True).reshape(N, H, W, gw)
    if stride > 1:
        y = _avg_pool_3x3(y, stride)      # avd layer (avd_first=True), conv2 stays stride 1
        xd = _avg_pool_kxk(x, stride)     # avg_down path of the downsample branch
    else:
        xd = x                            # AvgPool2d(1,1) == identity (layer1)
    Ho, Wo = y.shape[1], y.shape[2]
    HWo = Ho * Wo
    y2 = y.reshape(N, HWo, gw)
    xd2 = xd.reshape(N, HWo, Cin)
    ml, mr = _edge_masks(Ho, Wo)
    args = [y2, xd2, ml, mr, p["w2"], p["b2"], p["wse1"], p["bse1"], p["wse2"],
            p["bse2"], p["w3"], p["b3"], p["wd"], p["bd"]]
    in_specs = [pl.BlockSpec((1, HWo, gw), lambda n: (n, 0, 0)),
                pl.BlockSpec((1, HWo, Cin), lambda n: (n, 0, 0))]
    in_specs += [_full_spec(a) for a in args[2:]]
    kern = functools.partial(_block_first_kernel, H=Ho, W=Wo)
    out = pl.pallas_call(
        kern,
        out_shape=jax.ShapeDtypeStruct((N, HWo, Cout), jnp.float32),
        grid_spec=pltpu.PrefetchScalarGridSpec(
            num_scalar_prefetch=0, grid=(N,),
            in_specs=in_specs,
            out_specs=pl.BlockSpec((1, HWo, Cout), lambda n: (n, 0, 0)),
            scratch_shapes=[pltpu.VMEM((HWo + 2 * (Wo + 1), gw), jnp.float32)]),
        compiler_params=pltpu.CompilerParams(dimension_semantics=("parallel",)),
    )(*args)
    return out.reshape(N, Ho, Wo, Cout)


# ---------------------------------------------------------------------------
# Pallas kernel: SED head (freq-mean, time pools, fc1, attention block, framewise)
# ---------------------------------------------------------------------------

def _sed_head_kernel(f_ref, wfc_ref, bfc_ref, watt_ref, batt_ref, wcla_ref, bcla_ref,
                     frame_ref, clip_ref, logit_ref, *, ratio, frames_num):
    f = f_ref[0].astype(jnp.float32)                            # (Hf, T, C)
    x = jnp.mean(f, axis=0)                                     # (T, C)  mean over freq
    T = x.shape[0]

    # max_pool1d(3,1,1) + avg_pool1d(3,1,1) over time, via tiny shift matrices (K = T).
    ti = lax.broadcasted_iota(jnp.int32, (T, T), 0)
    si = lax.broadcasted_iota(jnp.int32, (T, T), 1)
    sel_prev = (si == ti - 1).astype(jnp.float32)
    sel_next = (si == ti + 1).astype(jnp.float32)
    prev = jnp.dot(sel_prev, x, preferred_element_type=jnp.float32)   # zero at t==0
    nxt = jnp.dot(sel_next, x, preferred_element_type=jnp.float32)    # zero at t==T-1
    avg = (prev + x + nxt) * (1.0 / 3.0)                        # count_include_pad=True
    tpos = lax.broadcasted_iota(jnp.int32, (T, 1), 0)
    neg = jnp.float32(-1e30)
    mx = jnp.maximum(jnp.maximum(jnp.where(tpos >= 1, prev, neg), x),
                     jnp.where(tpos <= T - 2, nxt, neg))
    x = mx + avg                                                # (T, C)

    # fc1 + ReLU (dropouts are inference no-ops)
    h = jnp.maximum(jnp.dot(x, wfc_ref[...], preferred_element_type=jnp.float32)
                    + bfc_ref[...], 0.0)                        # (T, C)

    # attention block
    att = jnp.dot(h, watt_ref[...], preferred_element_type=jnp.float32) + batt_ref[...]
    ta = jnp.tanh(att)
    ta = ta - jnp.max(ta, axis=0, keepdims=True)
    e = jnp.exp(ta)
    norm_att = e / jnp.sum(e, axis=0, keepdims=True)            # softmax over time, (T, K)

    cla_logit = jnp.dot(h, wcla_ref[...], preferred_element_type=jnp.float32) + bcla_ref[...]
    cla = jax.nn.sigmoid(cla_logit)                             # segmentwise (T, K)

    clip_ref[0] = jnp.sum(norm_att * cla, axis=0, keepdims=True).astype(clip_ref.dtype)
    logit_ref[0] = jnp.sum(norm_att * cla_logit, axis=0, keepdims=True).astype(logit_ref.dtype)

    # interpolate(x ratio) + pad-with-last-frame fused into one one-hot matmul:
    # frame[i] = cla[min(i // ratio, T - 1)]  (no integer division on the VPU).
    ii = lax.broadcasted_iota(jnp.int32, (frames_num, T), 0)
    tt = lax.broadcasted_iota(jnp.int32, (frames_num, T), 1)
    onehot = ((ii >= tt * ratio) & ((ii < (tt + 1) * ratio) | (tt == T - 1))).astype(jnp.float32)
    frame_ref[0] = jnp.dot(onehot, cla, preferred_element_type=jnp.float32).astype(frame_ref.dtype)


@functools.partial(jax.jit, static_argnames=("ratio", "frames_num"))
def _sed_head(feat, wfc, bfc, watt, batt, wcla, bcla, *, ratio, frames_num):
    N, Hf, T, C = feat.shape
    K = watt.shape[1]
    kern = functools.partial(_sed_head_kernel, ratio=ratio, frames_num=frames_num)
    frame, clip, logit = pl.pallas_call(
        kern,
        out_shape=(jax.ShapeDtypeStruct((N, frames_num, K), jnp.float32),
                   jax.ShapeDtypeStruct((N, 1, K), jnp.float32),
                   jax.ShapeDtypeStruct((N, 1, K), jnp.float32)),
        grid_spec=pltpu.PrefetchScalarGridSpec(
            num_scalar_prefetch=0,
            grid=(N,),
            in_specs=[pl.BlockSpec((1, Hf, T, C), lambda n: (n, 0, 0, 0)),
                      pl.BlockSpec((C, C), lambda n: (0, 0)),
                      pl.BlockSpec((1, C), lambda n: (0, 0)),
                      pl.BlockSpec((C, K), lambda n: (0, 0)),
                      pl.BlockSpec((1, K), lambda n: (0, 0)),
                      pl.BlockSpec((C, K), lambda n: (0, 0)),
                      pl.BlockSpec((1, K), lambda n: (0, 0))],
            out_specs=(pl.BlockSpec((1, frames_num, K), lambda n: (n, 0, 0)),
                       pl.BlockSpec((1, 1, K), lambda n: (n, 0, 0)),
                       pl.BlockSpec((1, 1, K), lambda n: (n, 0, 0))),
        ),
        compiler_params=pltpu.CompilerParams(dimension_semantics=("parallel",)),
    )(feat, wfc, bfc.reshape(1, C), watt, batt.reshape(1, K), wcla, bcla.reshape(1, K))
    return frame, clip.reshape(N, K), logit.reshape(N, K)


# ---------------------------------------------------------------------------
# full forward (Pallas path)
# ---------------------------------------------------------------------------

def resnest_sed_forward(x_nchw, params, cfg):
    frames_num = x_nchw.shape[3]
    x = jnp.transpose(x_nchw, (0, 2, 3, 1)).astype(jnp.float32)   # NHWC

    # deep stem: 3x(3x3 conv + BN + ReLU), then 3x3/2 max pool
    x = _conv3x3_bn_relu(x, params["stem"][0]["wf"], params["stem"][0]["bf"], stride=2)
    x = _conv3x3_bn_relu(x, params["stem"][1]["wf"], params["stem"][1]["bf"], stride=1)
    x = _conv3x3_bn_relu(x, params["stem"][2]["wf"], params["stem"][2]["bf"], stride=1)
    x = _max_pool_3x3_s2(x)

    # 4 ResNeSt stages
    for li, layer in enumerate(params["layers"]):
        stride = cfg["layer_strides"][li]
        x = _block_first(x, layer[0], stride=stride)
        for bp in layer[1:]:
            x = _block_identity(x, bp)

    # SED head
    hd = params["head"]
    frame, clip, logit = _sed_head(x, hd["wfc"], hd["bfc"], hd["watt"], hd["batt"],
                                   hd["wcla"], hd["bcla"],
                                   ratio=cfg["interpolate_ratio"], frames_num=frames_num)
    return {"framewise_output": frame, "logit": logit, "clipwise_output": clip}


# ---------------------------------------------------------------------------
# pure-JAX reference (same math, lax.conv) for correctness checking
# ---------------------------------------------------------------------------

def reference_forward(x_nchw, raw, cfg):
    HI = lax.Precision.HIGHEST
    frames_num = x_nchw.shape[3]
    x = jnp.transpose(x_nchw, (0, 2, 3, 1)).astype(jnp.float32)

    def conv3x3(x, w, stride):
        return lax.conv_general_dilated(x, w, (stride, stride), ((1, 1), (1, 1)),
                                        dimension_numbers=("NHWC", "HWIO", "NHWC"),
                                        precision=HI)

    for i, st in enumerate(raw["stem"]):
        x = jax.nn.relu(conv3x3(x, st["w"], 2 if i == 0 else 1) * st["s"] + st["b"])
    x = _max_pool_3x3_s2(x)

    for li, layer in enumerate(raw["layers"]):
        stride = cfg["layer_strides"][li]
        for bi, bp in enumerate(layer):
            is_first = bi == 0
            resid = x
            y = jax.nn.relu(jnp.einsum("nhwc,cd->nhwd", x, bp["w1"], precision=HI)
                            * bp["s1"] + bp["b1"])
            if is_first and stride > 1:
                y = _avg_pool_3x3(y, stride)
            u = jax.nn.relu(conv3x3(y, bp["w2"], 1) * bp["s2"] + bp["b2"])
            gap = jnp.mean(u, axis=(1, 2))
            t = jnp.einsum("ng,ig->ni", gap, bp["wse1"], precision=HI)
            t = jax.nn.relu((t + bp["cse1"]) * bp["sse1"] + bp["bse1"])
            g = jnp.einsum("ni,gi->ng", t, bp["wse2"], precision=HI) + bp["cse2"]
            u = u * jax.nn.sigmoid(g)[:, None, None, :]
            out = jnp.einsum("nhwc,cd->nhwd", u, bp["w3"], precision=HI) * bp["s3"] + bp["b3"]
            if is_first:
                if stride > 1:
                    resid = _avg_pool_kxk(x, stride)
                resid = jnp.einsum("nhwc,cd->nhwd", resid, bp["wd"], precision=HI) \
                    * bp["sd"] + bp["bd"]
            x = jax.nn.relu(out + resid)

    xm = jnp.mean(x, axis=1)                                    # (N, T, C)
    N, T, C = xm.shape
    zp = jnp.pad(xm, ((0, 0), (1, 1), (0, 0)))
    prev, cur, nxt = zp[:, :-2], zp[:, 1:-1], zp[:, 2:]
    avg = (prev + cur + nxt) / 3.0
    tpos = jnp.arange(T)[None, :, None]
    neg = jnp.float32(-1e30)
    mx = jnp.maximum(jnp.maximum(jnp.where(tpos >= 1, prev, neg), cur),
                     jnp.where(tpos <= T - 2, nxt, neg))
    xm = mx + avg

    hd = raw["head"]
    h = jax.nn.relu(jnp.einsum("ntc,cd->ntd", xm, hd["wfc"], precision=HI) + hd["bfc"])
    att = jnp.einsum("ntc,ck->ntk", h, hd["watt"], precision=HI) + hd["batt"]
    norm_att = jax.nn.softmax(jnp.tanh(att), axis=1)
    cla_logit = jnp.einsum("ntc,ck->ntk", h, hd["wcla"], precision=HI) + hd["bcla"]
    cla = jax.nn.sigmoid(cla_logit)
    clip = jnp.sum(norm_att * cla, axis=1)
    logit = jnp.sum(norm_att * cla_logit, axis=1)
    ratio = cfg["interpolate_ratio"]
    frame = jnp.repeat(cla, ratio, axis=1)
    pad = jnp.tile(frame[:, -1:, :], (1, frames_num - ratio * T, 1))
    frame = jnp.concatenate([frame, pad], axis=1)
    return {"framewise_output": frame, "logit": logit, "clipwise_output": clip}


# ---------------------------------------------------------------------------
# synthetic parameters (raw) + BN folding for the Pallas path
# ---------------------------------------------------------------------------

def init_params(key, cfg):
    kit = iter(jax.random.split(key, 1024))

    def nxt():
        return next(kit)

    def w_init(shape, fan_in):
        return (jax.random.normal(nxt(), shape) * (0.7 * math.sqrt(2.0 / fan_in))
                ).astype(jnp.float32)

    def bn_init(c):
        s = (1.0 + 0.1 * jax.random.normal(nxt(), (c,))).astype(jnp.float32)
        b = (0.05 * jax.random.normal(nxt(), (c,))).astype(jnp.float32)
        return s, b

    def bias_init(c):
        return (0.05 * jax.random.normal(nxt(), (c,))).astype(jnp.float32)

    sw = cfg["stem_width"]
    chs = [3, sw, sw, 2 * sw]
    stem = []
    for i in range(3):
        cin, cout = chs[i], chs[i + 1]
        s, b = bn_init(cout)
        stem.append({"w": w_init((3, 3, cin, cout), 9 * cin), "s": s, "b": b})

    raw = {"stem": stem, "layers": [], "head": None}
    inplanes = 2 * sw
    for li, planes in enumerate(cfg["layer_planes"]):
        gw = planes                       # cardinality=1, bottleneck_width=64
        cout = planes * cfg["expansion"]
        inter = max(gw // 4, 32)
        layer = []
        for bi in range(cfg["layer_blocks"][li]):
            cin = inplanes if bi == 0 else cout
            s1, b1 = bn_init(gw)
            s2, b2 = bn_init(gw)
            sse1, bse1 = bn_init(inter)
            s3, b3 = bn_init(cout)
            bp = {"w1": w_init((cin, gw), cin), "s1": s1, "b1": b1,
                  "w2": w_init((3, 3, gw, gw), 9 * gw), "s2": s2, "b2": b2,
                  "wse1": w_init((inter, gw), gw), "cse1": bias_init(inter),
                  "sse1": sse1, "bse1": bse1,
                  "wse2": w_init((gw, inter), inter), "cse2": bias_init(gw),
                  "w3": w_init((gw, cout), gw), "s3": s3, "b3": b3}
            if bi == 0:
                sd, bd = bn_init(cout)
                bp["wd"] = w_init((cin, cout), cin)
                bp["sd"] = sd
                bp["bd"] = bd
            layer.append(bp)
        raw["layers"].append(layer)
        inplanes = cout

    c_feat = inplanes
    K = cfg["num_classes"]
    raw["head"] = {"wfc": w_init((c_feat, c_feat), c_feat), "bfc": bias_init(c_feat),
                   "watt": w_init((c_feat, K), c_feat), "batt": jnp.zeros((K,), jnp.float32),
                   "wcla": w_init((c_feat, K), c_feat), "bcla": bias_init(K)}
    return raw


def fold_params(raw):
    """Fold inference BatchNorm scales into conv weights (wrapper-side, one-time)."""
    def f(w, s):
        return (w * s).astype(jnp.float32)

    stem = [{"wf": f(st["w"], st["s"]), "bf": st["b"]} for st in raw["stem"]]
    layers = []
    for layer in raw["layers"]:
        fl = []
        for bp in layer:
            gw = bp["w1"].shape[1]
            inter = bp["wse1"].shape[0]
            cout = bp["w3"].shape[1]
            fb = {"w1": f(bp["w1"], bp["s1"]), "b1": bp["b1"].reshape(1, gw),
                  "w2": f(bp["w2"], bp["s2"]), "b2": bp["b2"].reshape(1, gw),
                  "wse1": (bp["wse1"] * bp["sse1"][:, None]).astype(jnp.float32),
                  "bse1": (bp["cse1"] * bp["sse1"] + bp["bse1"]).reshape(inter, 1),
                  "wse2": jnp.transpose(bp["wse2"]).astype(jnp.float32),   # (inter, gw)
                  "bse2": bp["cse2"].reshape(1, gw),
                  "w3": f(bp["w3"], bp["s3"]), "b3": bp["b3"].reshape(1, cout)}
            if "wd" in bp:
                fb["wd"] = f(bp["wd"], bp["sd"])
                fb["bd"] = bp["bd"].reshape(1, cout)
            fl.append(fb)
        layers.append(fl)
    return {"stem": stem, "layers": layers, "head": dict(raw["head"])}


# ---------------------------------------------------------------------------
# main
# ---------------------------------------------------------------------------

if __name__ == "__main__":
    # Scaled-down ResNestSED: real structure (deep stem, [3,4,6,3] bottlenecks with
    # radix-1 split-attention, avd(avd_first) + avg_down, SED attention head) with
    # small channel counts and a 64x64 input spectrogram.
    cfg = dict(stem_width=16,
               layer_planes=(16, 32, 64, 128),
               layer_blocks=(3, 4, 6, 3),
               layer_strides=(1, 2, 2, 2),
               expansion=4,
               num_classes=64,
               interpolate_ratio=30)

    key = jax.random.PRNGKey(0)
    kx, kp = jax.random.split(key)
    N, Cin, H, W = 2, 3, 64, 64
    x = jax.random.normal(kx, (N, Cin, H, W), dtype=jnp.float32)

    raw = init_params(kp, cfg)
    params = fold_params(raw)

    out = resnest_sed_forward(x, params, cfg)
    out = jax.block_until_ready(out)

    assert out["framewise_output"].shape == (N, W, cfg["num_classes"]), out["framewise_output"].shape
    assert out["clipwise_output"].shape == (N, cfg["num_classes"])
    assert out["logit"].shape == (N, cfg["num_classes"])

    ref = jax.jit(lambda xx, rr: reference_forward(xx, rr, cfg))(x, raw)
    ref = jax.block_until_ready(ref)
    for k in ("framewise_output", "clipwise_output", "logit"):
        err = float(jnp.max(jnp.abs(out[k] - ref[k])))
        assert err < 5e-3, f"{k}: max abs err {err}"

    print("KERNEL_OK")
</pallas_src>

<mosaic_0001>
module attributes {stable_mosaic.version = 11 : i64} {
  func.func @_dense_kernel(%arg0: i32, %arg1: memref<1x1024x27xf32, #tpu.memory_space<vmem>>, %arg2: memref<27x16xf32, #tpu.memory_space<vmem>>, %arg3: memref<1x16xf32, #tpu.memory_space<vmem>>, %arg4: memref<1x1024x16xf32, #tpu.memory_space<vmem>>) attributes {dimension_semantics = [#tpu.dimension_semantics<parallel>], iteration_bounds = array<i64: 2>, scalar_prefetch = 0 : i64, scratch_operands = 0 : i64, tpu.core_type = #tpu.core_type<tc>, window_params = [{transform_indices = @transform_0, window_bounds = array<i64: 1, 1024, 27>}, {pipeline_mode = #tpu.pipeline_mode<synchronous>, transform_indices = @transform_1, window_bounds = array<i64: 27, 16>}, {pipeline_mode = #tpu.pipeline_mode<synchronous>, transform_indices = @transform_2, window_bounds = array<i64: 1, 16>}, {transform_indices = @transform_3, window_bounds = array<i64: 1, 1024, 16>}]} {
    %c0 = arith.constant 0 : index
    %c0_0 = arith.constant 0 : index
    %c0_1 = arith.constant 0 : index
    %0 = vector.load %arg1[%c0, %c0_0, %c0_1] : memref<1x1024x27xf32, #tpu.memory_space<vmem>>, vector<1x1024x27xf32>
    %1 = vector.shape_cast %0 : vector<1x1024x27xf32> to vector<1024x27xf32>
    %c0_2 = arith.constant 0 : index
    %c0_3 = arith.constant 0 : index
    %2 = vector.load %arg2[%c0_2, %c0_3] : memref<27x16xf32, #tpu.memory_space<vmem>>, vector<27x16xf32>
    %cst = arith.constant dense<0.000000e+00> : vector<1024x16xf32>
    %3 = tpu.matmul %1, %2, %cst {dimension_numbers = #tpu.dot_dimension_numbers<[1], [0], [0], [1], [0, 0, 1, 1], [], []>} : vector<1024x27xf32>, vector<27x16xf32>, vector<1024x16xf32> -> vector<1024x16xf32>
    %c0_4 = arith.constant 0 : index
    %c0_5 = arith.constant 0 : index
    %4 = vector.load %arg3[%c0_4, %c0_5] : memref<1x16xf32, #tpu.memory_space<vmem>>, vector<1x16xf32>
    %5 = vector.broadcast %4 : vector<1x16xf32> to vector<1024x16xf32>
    %6 = arith.addf %3, %5 : vector<1024x16xf32>
    %cst_6 = arith.constant 0.000000e+00 : f32
    %7 = vector.broadcast %cst_6 : f32 to vector<1024x16xf32>
    %8 = arith.maximumf %6, %7 : vector<1024x16xf32>
    %c0_7 = arith.constant 0 : index
    %c0_8 = arith.constant 0 : index
    %c0_9 = arith.constant 0 : index
    %9 = vector.load %arg4[%c0_7, %c0_8, %c0_9] : memref<1x1024x16xf32, #tpu.memory_space<vmem>>, vector<1x1024x16xf32>
    %10 = vector.shape_cast %9 : vector<1x1024x16xf32> to vector<1024x16xf32>
    %11 = vector.shape_cast %8 : vector<1024x16xf32> to vector<1x1024x16xf32>
    tpu.vector_store %arg4[%c0_7, %c0_8, %c0_9], %11 {strides = array<i32>} : memref<1x1024x16xf32, #tpu.memory_space<vmem>>, vector<1x1024x16xf32>,
    return
  }
  func.func @transform_0(%arg0: i32) -> (i32, i32, i32) {
    %c0_i32 = arith.constant 0 : i32
    %c0_i32_0 = arith.constant 0 : i32
    %c0_i32_1 = arith.constant 0 : i32
    return %arg0, %c0_i32, %c0_i32_0 : i32, i32, i32
  }
  func.func @transform_1(%arg0: i32) -> (i32, i32) {
    %c0_i32 = arith.constant 0 : i32
    %c0_i32_0 = arith.constant 0 : i32
    %c0_i32_1 = arith.constant 0 : i32
    return %c0_i32, %c0_i32_0 : i32, i32
  }
  func.func @transform_2(%arg0: i32) -> (i32, i32) {
    %c0_i32 = arith.constant 0 : i32
    %c0_i32_0 = arith.constant 0 : i32
    %c0_i32_1 = arith.constant 0 : i32
    return %c0_i32, %c0_i32_0 : i32, i32
  }
  func.func @transform_3(%arg0: i32) -> (i32, i32, i32) {
    %c0_i32 = arith.constant 0 : i32
    %c0_i32_0 = arith.constant 0 : i32
    %c0_i32_1 = arith.constant 0 : i32
    return %arg0, %c0_i32, %c0_i32_0 : i32, i32, i32
  }
}

</mosaic_0001>

<bundles_post_ra>
// kernel: _conv3x3_bn_relu.1
= control target key start
LH: loop header
LB: loop body
LE: loop exit
PB: predicated region body
PF: predicated region fallthrough
CT: control target
= control target key end

     0   :  { %s2243_s12 = smov 0   ;;  %s2940_s0 = inlined_call_operand.vmem [shape: f32[2,1024,27], index: 0, kind: input, shape index: {}]   ;;  %s2941_s1 = inlined_call_operand.vmem [shape: f32[27,16], index: 1, kind: input, shape index: {}]   ;;  %s2942_s2 = inlined_call_operand.vmem [shape: f32[1,16], index: 2, kind: input, shape index: {}]   ;;  %s2943_s3 = inlined_call_operand.vmem [shape: f32[2,1024,16], index: 3, kind: output, shape index: {}]  }
   0x1 LB: > { %s1716_s13 = sadd.s32 4294967295, %s2220_s12   ;;  %p1720_p0 = scmp.ge.s32.totalorder %s2220_s12, 1  ;;  %s2220_s12 = sphi %s2243_s12, %s13_s12  }
   0x2   : > { %p137_p1 = scmp.lt.s32.totalorder %s2220_s12, 3 }
   0x4   : > { %p138_p2 = pnand %p1720_p0, %p137_p1 }
   0x5   : > { %v299_v0 = vld [vmem:[%s2941_s1] sm:$0xff] (!%p138_p2)  ;;  %v300_v1 = vld [vmem:[%s2941_s1 + $0x8] sm:$0xff] (!%p138_p2)  ;;  %v301_v2 = vld [vmem:[%s2941_s1 + $0x10] sm:$0xff] (!%p138_p2)  ;;  %vm695_vm0 = vcmask (!%p138_p2), 1042432   ;;  %p161_p3 = scmp.lt.s32.totalorder (!%p138_p2), %s1716_s13, 1  ;;  %vm2222_vm1 = vmmov (!%p138_p2), 1  }
   0x6   : > { %141 = sbr.rel (%p138_p2) target bundleno = 361 (0x169), region = 32  ;;  %v2191_v3 = vpack.c.bf16 (!%p138_p2), %v300_v1, %v299_v0  ;;  %v302_v4 = vld [vmem:[%s2941_s1 + $0x18] sm:$0x7] (!%p138_p2)  ;;  %vm2263_vm2 = vmpackc.low (!%p138_p2), %vm695_vm0, %vm2222_vm1  ;;  %vm310_vm3 = vcmask (!%p138_p2), 220160   ;;  %vm1532_vm4 = vcmask (!%p138_p2), 130048  }
   0x7   : > { %v2195_v5 = vpack.c.bf16 (!%p138_p2), %v302_v4, %v301_v2 }
   0x8   : > { %2192 = vmatprep.subr.bf16.mxu0 (!%p138_p2), %v2191_v3  ;;  %2201 = vmatprep.subr.bf16.mxu1 (!%p138_p2), %v2191_v3 }
   0x9   : > { %2194 = vmatpush3.bf16.msra.mxu0 (!%p138_p2), %v2191_v3  ;;  %2203 = vmatpush3.bf16.msra.mxu1 (!%p138_p2), %v2191_v3 }
   0xa   : > { %2197 = vmatprep.subr.msk.bf16.mxu0 (!%p138_p2), %vm2263_vm2, %v2195_v5  ;;  %2202 = vmatprep.subr.msk.bf16.mxu1 (!%p138_p2), %vm2263_vm2, %v2195_v5 }
   0xd   : > { %s2947_s13 = smov (!%p161_p3, %s1716_s13), 1  ;;  %2200 = vmatpush3.bf16.msk.msra.mxu0 %vm2263_vm2, %v2195_v5  ;;  %2204 = vmatpush3.bf16.msk.msra.mxu1 %vm2263_vm2, %v2195_v5 }
   0xe   : > { %s1857_s22 = sshll.u32 %s2947_s13, 10 }
   0xf   : > { %s2279_s25 = scalar_lea.vmem %s2940_s0, %s1857_s22  ;;  %s2553_s30 = scalar_lea.vmem %s2943_s3, %s1857_s22 }
  0x10   : > { %v171_v7 = vld [vmem:[%s2279_s25] sm:$0xff]  ;;  %v172_v9 = vld [vmem:[%s2279_s25 + $0x8] sm:$0xff]  ;;  %v173_v11 = vld [vmem:[%s2279_s25 + $0x10] sm:$0xff] }
  0x11   : > { %v235_v8 = vld [vmem:[%s2279_s25 + $0x200] sm:$0xff]  ;;  %1999 = vmatprep.mubr.msk.f32.mxu0 %vm310_vm3, %v171_v7  ;;  %v236_v10 = vld [vmem:[%s2279_s25 + $0x208] sm:$0xff]  ;;  %v237_v12 = vld [vmem:[%s2279_s25 + $0x210] sm:$0xff] }
  0x12   : > { %2095 = vmatprep.mubr.msk.f32.mxu1 %vm310_vm3, %v235_v8  ;;  %2000 = vmatmul.mubr.msk.f32.vlgmr.msra.gmra.mrb[0].mxu0 %vm310_vm3, %v172_v9  ;;  %v174_v13 = vld [vmem:[%s2279_s25 + $0x18] sm:$0xff]  ;;  %v175_v15 = vld [vmem:[%s2279_s25 + $0x20] sm:$0xff]  ;;  %v176_v17 = vld [vmem:[%s2279_s25 + $0x28] sm:$0xff] }
  0x13   : > { %2096 = vmatmul.mubr.msk.f32.vlgmr.msra.gmra.mrb[0].mxu1 %vm310_vm3, %v236_v10  ;;  %2002 = vmatprep.mubr.msk.f32.mxu0 %vm310_vm3, %v173_v11  ;;  %v238_v14 = vld [vmem:[%s2279_s25 + $0x218] sm:$0xff]  ;;  %v239_v16 = vld [vmem:[%s2279_s25 + $0x220] sm:$0xff]  ;;  %v240_v18 = vld [vmem:[%s2279_s25 + $0x228] sm:$0xff] }
  0x14   : > { %2098 = vmatprep.mubr.msk.f32.mxu1 %vm310_vm3, %v237_v12  ;;  %v177_v19 = vld [vmem:[%s2279_s25 + $0x30] sm:$0xff]  ;;  %v178_v21 = vld [vmem:[%s2279_s25 + $0x38] sm:$0xff]  ;;  %v179_v23 = vld [vmem:[%s2279_s25 + $0x40] sm:$0xff] }
  0x15   : > { %v241_v20 = vld [vmem:[%s2279_s25 + $0x230] sm:$0xff]  ;;  %v242_v22 = vld [vmem:[%s2279_s25 + $0x238] sm:$0xff]  ;;  %v243_v24 = vld [vmem:[%s2279_s25 + $0x240] sm:$0xff] }
  0x16   : > { %2003 = vmatmul.mubr.msk.f32.gmra.mrb[2].mxu0 %vm310_vm3, %v174_v13  ;;  %v180_v25 = vld [vmem:[%s2279_s25 + $0x48] sm:$0xff]  ;;  %v181_v27 = vld [vmem:[%s2279_s25 + $0x50] sm:$0xff]  ;;  %v182_v29 = vld [vmem:[%s2279_s25 + $0x58] sm:$0xff] }
  0x17   : > { %2099 = vmatmul.mubr.msk.f32.gmra.mrb[2].mxu1 %vm310_vm3, %v238_v14  ;;  %2005 = vmatprep.mubr.msk.f32.mxu0 %vm310_vm3, %v175_v15  ;;  %v244_v26 = vld [vmem:[%s2279_s25 + $0x248] sm:$0xff]  ;;  %v245_v28 = vld [vmem:[%s2279_s25 + $0x250] sm:$0xff]  ;;  %v246_v30 = vld [vmem:[%s2279_s25 + $0x258] sm:$0xff] }
  0x18   : > { %2101 = vmatprep.mubr.msk.f32.mxu1 %vm310_vm3, %v239_v16  ;;  %v183_v31 = vld [vmem:[%s2279_s25 + $0x60] sm:$0xff]  ;;  %v184_v33 = vld [vmem:[%s2279_s25 + $0x68] sm:$0xff]  ;;  %v185_v35 = vld [vmem:[%s2279_s25 + $0x70] sm:$0xff] }
  0x19   : > { %v247_v32 = vld [vmem:[%s2279_s25 + $0x260] sm:$0xff]  ;;  %v248_v34 = vld [vmem:[%s2279_s25 + $0x268] sm:$0xff]  ;;  %v249_v36 = vld [vmem:[%s2279_s25 + $0x270] sm:$0xff] }
  0x1a   : > { %2006 = vmatmul.mubr.msk.f32.gmra.mrb[4].mxu0 %vm310_vm3, %v176_v17  ;;  %v186_v37 = vld [vmem:[%s2279_s25 + $0x78] sm:$0xff]  ;;  %v187_v39 = vld [vmem:[%s2279_s25 + $0x80] sm:$0xff]  ;;  %v188_v41 = vld [vmem:[%s2279_s25 + $0x88] sm:$0xff] }
  0x1b   : > { %2102 = vmatmul.mubr.msk.f32.gmra.mrb[4].mxu1 %vm310_vm3, %v240_v18  ;;  %2008 = vmatprep.mubr.msk.f32.mxu0 %vm310_vm3, %v177_v19  ;;  %v250_v38 = vld [vmem:[%s2279_s25 + $0x278] sm:$0xff]  ;;  %v251_v40 = vld [vmem:[%s2279_s25 + $0x280] sm:$0xff]  ;;  %v252_v42 = vld [vmem:[%s2279_s25 + $0x288] sm:$0xff] }
  0x1c   : > { %2104 = vmatprep.mubr.msk.f32.mxu1 %vm310_vm3, %v241_v20  ;;  %v189_v43 = vld [vmem:[%s2279_s25 + $0x90] sm:$0xff]  ;;  %v190_v45 = vld [vmem:[%s2279_s25 + $0x98] sm:$0xff]  ;;  %v191_v47 = vld [vmem:[%s2279_s25 + $0xa0] sm:$0xff] }
  0x1d   : > { %v253_v44 = vld [vmem:[%s2279_s25 + $0x290] sm:$0xff]  ;;  %v254_v46 = vld [vmem:[%s2279_s25 + $0x298] sm:$0xff]  ;;  %v255_v48 = vld [vmem:[%s2279_s25 + $0x2a0] sm:$0xff] }
  0x1e   : > { %2009 = vmatmul.mubr.msk.f32.gmra.mrb[6].mxu0 %vm310_vm3, %v178_v21  ;;  %v192_v49 = vld [vmem:[%s2279_s25 + $0xa8] sm:$0xff]  ;;  %v193_v51 = vld [vmem:[%s2279_s25 + $0xb0] sm:$0xff]  ;;  %v194_v53 = vld [vmem:[%s2279_s25 + $0xb8] sm:$0xff] }
  0x1f   : > { %2105 = vmatmul.mubr.msk.f32.gmra.mrb[6].mxu1 %vm310_vm3, %v242_v22  ;;  %2011 = vmatprep.mubr.msk.f32.mxu0 %vm310_vm3, %v179_v23  ;;  %v256_v50 = vld [vmem:[%s2279_s25 + $0x2a8] sm:$0xff]  ;;  %v257_v52 = vld [vmem:[%s2279_s25 + $0x2b0] sm:$0xff]  ;;  %v258_v54 = vld [vmem:[%s2279_s25 + $0x2b8] sm:$0xff] }
  0x20   : > { %2107 = vmatprep.mubr.msk.f32.mxu1 %vm310_vm3, %v243_v24  ;;  %v195_v55 = vld [vmem:[%s2279_s25 + $0xc0] sm:$0xff]  ;;  %v196_v57 = vld [vmem:[%s2279_s25 + $0xc8] sm:$0xff]  ;;  %v197_v59 = vld [vmem:[%s2279_s25 + $0xd0] sm:$0xff] }
  0x21   : > { %v259_v56 = vld [vmem:[%s2279_s25 + $0x2c0] sm:$0xff]  ;;  %v260_v58 = vld [vmem:[%s2279_s25 + $0x2c8] sm:$0xff]  ;;  %v261_v60 = vld [vmem:[%s2279_s25 + $0x2d0] sm:$0xff] }
  0x22   : > { %2012 = vmatmul.mubr.msk.f32.gmra.mrb[8].mxu0 %vm310_vm3, %v180_v25  ;;  %v198_v61 = vld [vmem:[%s2279_s25 + $0xd8] sm:$0xff]  ;;  %v199_v63 = vld [vmem:[%s2279_s25 + $0xe0] sm:$0xff]  ;;  %v200_v1 = vld [vmem:[%s2279_s25 + $0xe8] sm:$0xff] }
  0x23   : > { %2108 = vmatmul.mubr.msk.f32.gmra.mrb[8].mxu1 %vm310_vm3, %v244_v26  ;;  %2014 = vmatprep.mubr.msk.f32.mxu0 %vm310_vm3, %v181_v27  ;;  %v262_v62 = vld [vmem:[%s2279_s25 + $0x2d8] sm:$0xff]  ;;  %v263_v0 = vld [vmem:[%s2279_s25 + $0x2e0] sm:$0xff]  ;;  %v264_v2 = vld [vmem:[%s2279_s25 + $0x2e8] sm:$0xff] }
  0x24   : > { %2110 = vmatprep.mubr.msk.f32.mxu1 %vm310_vm3, %v245_v28  ;;  %v201_v3 = vld [vmem:[%s2279_s25 + $0xf0] sm:$0xff]  ;;  %v202_v5 = vld [vmem:[%s2279_s25 + $0xf8] sm:$0xff]  ;;  %v203_v7 = vld [vmem:[%s2279_s25 + $0x100] sm:$0xff] }
  0x25   : > { %v265_v4 = vld [vmem:[%s2279_s25 + $0x2f0] sm:$0xff]  ;;  %v266_v6 = vld [vmem:[%s2279_s25 + $0x2f8] sm:$0xff]  ;;  %v267_v8 = vld [vmem:[%s2279_s25 + $0x300] sm:$0xff] }
  0x26   : > { %2015 = vmatmul.mubr.msk.f32.gmra.mrb[10].mxu0 %vm310_vm3, %v182_v29  ;;  %v204_v9 = vld [vmem:[%s2279_s25 + $0x108] sm:$0xff]  ;;  %v205_v11 = vld [vmem:[%s2279_s25 + $0x110] sm:$0xff]  ;;  %v206_v13 = vld [vmem:[%s2279_s25 + $0x118] sm:$0xff] }
  0x27   : > { %2111 = vmatmul.mubr.msk.f32.gmra.mrb[10].mxu1 %vm310_vm3, %v246_v30  ;;  %2017 = vmatprep.mubr.msk.f32.mxu0 %vm310_vm3, %v183_v31  ;;  %v268_v10 = vld [vmem:[%s2279_s25 + $0x308] sm:$0xff]  ;;  %v269_v12 = vld [vmem:[%s2279_s25 + $0x310] sm:$0xff]  ;;  %v270_v14 = vld [vmem:[%s2279_s25 + $0x318] sm:$0xff] }
  0x28   : > { %2113 = vmatprep.mubr.msk.f32.mxu1 %vm310_vm3, %v247_v32  ;;  %v207_v15 = vld [vmem:[%s2279_s25 + $0x120] sm:$0xff]  ;;  %v208_v17 = vld [vmem:[%s2279_s25 + $0x128] sm:$0xff]  ;;  %v209_v19 = vld [vmem:[%s2279_s25 + $0x130] sm:$0xff] }
  0x29   : > { %v271_v16 = vld [vmem:[%s2279_s25 + $0x320] sm:$0xff]  ;;  %v272_v18 = vld [vmem:[%s2279_s25 + $0x328] sm:$0xff]  ;;  %v273_v20 = vld [vmem:[%s2279_s25 + $0x330] sm:$0xff] }
  0x2a   : > { %2018 = vmatmul.mubr.msk.f32.gmra.mrb[12].mxu0 %vm310_vm3, %v184_v33  ;;  %v210_v21 = vld [vmem:[%s2279_s25 + $0x138] sm:$0xff]  ;;  %v211_v23 = vld [vmem:[%s2279_s25 + $0x140] sm:$0xff]  ;;  %v212_v25 = vld [vmem:[%s2279_s25 + $0x148] sm:$0xff] }
  0x2b   : > { %2114 = vmatmul.mubr.msk.f32.gmra.mrb[12].mxu1 %vm310_vm3, %v248_v34  ;;  %2020 = vmatprep.mubr.msk.f32.mxu0 %vm310_vm3, %v185_v35  ;;  %v274_v22 = vld [vmem:[%s2279_s25 + $0x338] sm:$0xff]  ;;  %v275_v24 = vld [vmem:[%s2279_s25 + $0x340] sm:$0xff]  ;;  %v276_v26 = vld [vmem:[%s2279_s25 + $0x348] sm:$0xff] }
  0x2c   : > { %2116 = vmatprep.mubr.msk.f32.mxu1 %vm310_vm3, %v249_v36  ;;  %v213_v27 = vld [vmem:[%s2279_s25 + $0x150] sm:$0xff]  ;;  %v214_v29 = vld [vmem:[%s2279_s25 + $0x158] sm:$0xff]  ;;  %v215_v31 = vld [vmem:[%s2279_s25 + $0x160] sm:$0xff] }
  0x2d   : > { %v277_v28 = vld [vmem:[%s2279_s25 + $0x350] sm:$0xff]  ;;  %v278_v30 = vld [vmem:[%s2279_s25 + $0x358] sm:$0xff]  ;;  %v279_v32 = vld [vmem:[%s2279_s25 + $0x360] sm:$0xff] }
  0x2e   : > { %2021 = vmatmul.mubr.msk.f32.gmra.mrb[14].mxu0 %vm310_vm3, %v186_v37  ;;  %v216_v33 = vld [vmem:[%s2279_s25 + $0x168] sm:$0xff]  ;;  %v217_v35 = vld [vmem:[%s2279_s25 + $0x170] sm:$0xff]  ;;  %v218_v37 = vld [vmem:[%s2279_s25 + $0x178] sm:$0xff] }
  0x2f   : > { %2117 = vmatmul.mubr.msk.f32.gmra.mrb[14].mxu1 %vm310_vm3, %v250_v38  ;;  %2023 = vmatprep.mubr.msk.f32.mxu0 %vm310_vm3, %v187_v39  ;;  %v280_v34 = vld [vmem:[%s2279_s25 + $0x368] sm:$0xff]  ;;  %v281_v36 = vld [vmem:[%s2279_s25 + $0x370] sm:$0xff]  ;;  %v282_v38 = vld [vmem:[%s2279_s25 + $0x378] sm:$0xff] }
  0x30   : > { %2119 = vmatprep.mubr.msk.f32.mxu1 %vm310_vm3, %v251_v40  ;;  %v219_v39 = vld [vmem:[%s2279_s25 + $0x180] sm:$0xff] }
  0x31   : > { %v283_v40 = vld [vmem:[%s2279_s25 + $0x380] sm:$0xff] }
  0x32   : > { %2024 = vmatmul.mubr.msk.f32.gmra.mrb[16].mxu0 %vm310_vm3, %v188_v41  ;;  %v220_v41 = vld [vmem:[%s2279_s25 + $0x188] sm:$0xff] }
  0x33   : > { %2120 = vmatmul.mubr.msk.f32.gmra.mrb[16].mxu1 %vm310_vm3, %v252_v42  ;;  %2026 = vmatprep.mubr.msk.f32.mxu0 %vm310_vm3, %v189_v43  ;;  %v284_v42 = vld [vmem:[%s2279_s25 + $0x388] sm:$0xff]  ;;  %v221_v43 = vld [vmem:[%s2279_s25 + $0x190] sm:$0xff] }
  0x34   : > { %2122 = vmatprep.mubr.msk.f32.mxu1 %vm310_vm3, %v253_v44  ;;  %v285_v44 = vld [vmem:[%s2279_s25 + $0x390] sm:$0xff] }
  0x36   : > { %2027 = vmatmul.mubr.msk.f32.gmra.mrb[18].mxu0 %vm310_vm3, %v190_v45  ;;  %v222_v45 = vld [vmem:[%s2279_s25 + $0x198] sm:$0xff] }
  0x37   : > { %2123 = vmatmul.mubr.msk.f32.gmra.mrb[18].mxu1 %vm310_vm3, %v254_v46  ;;  %2029 = vmatprep.mubr.msk.f32.mxu0 %vm310_vm3, %v191_v47  ;;  %v286_v46 = vld [vmem:[%s2279_s25 + $0x398] sm:$0xff]  ;;  %v223_v47 = vld [vmem:[%s2279_s25 + $0x1a0] sm:$0xff] }
  0x38   : > { %2125 = vmatprep.mubr.msk.f32.mxu1 %vm310_vm3, %v255_v48  ;;  %v287_v48 = vld [vmem:[%s2279_s25 + $0x3a0] sm:$0xff] }
  0x3a   : > { %2030 = vmatmul.mubr.msk.f32.gmra.mrb[20].mxu0 %vm310_vm3, %v192_v49  ;;  %v224_v49 = vld [vmem:[%s2279_s25 + $0x1a8] sm:$0xff] }
  0x3b   : > { %2126 = vmatmul.mubr.msk.f32.gmra.mrb[20].mxu1 %vm310_vm3, %v256_v50  ;;  %2032 = vmatprep.mubr.msk.f32.mxu0 %vm310_vm3, %v193_v51  ;;  %v288_v50 = vld [vmem:[%s2279_s25 + $0x3a8] sm:$0xff]  ;;  %v225_v51 = vld [vmem:[%s2279_s25 + $0x1b0] sm:$0xff] }
  0x3c   : > { %2128 = vmatprep.mubr.msk.f32.mxu1 %vm310_vm3, %v257_v52  ;;  %v289_v52 = vld [vmem:[%s2279_s25 + $0x3b0] sm:$0xff] }
  0x3e   : > { %2033 = vmatmul.mubr.msk.f32.gmra.mrb[22].mxu0 %vm310_vm3, %v194_v53  ;;  %v226_v53 = vld [vmem:[%s2279_s25 + $0x1b8] sm:$0xff] }
  0x3f   : > { %2129 = vmatmul.mubr.msk.f32.gmra.mrb[22].mxu1 %vm310_vm3, %v258_v54  ;;  %2035 = vmatprep.mubr.msk.f32.mxu0 %vm310_vm3, %v195_v55  ;;  %v290_v54 = vld [vmem:[%s2279_s25 + $0x3b8] sm:$0xff]  ;;  %v227_v55 = vld [vmem:[%s2279_s25 + $0x1c0] sm:$0xff] }
  0x40   : > { %2131 = vmatprep.mubr.msk.f32.mxu1 %vm310_vm3, %v259_v56  ;;  %v291_v56 = vld [vmem:[%s2279_s25 + $0x3c0] sm:$0xff] }
  0x42   : > { %2036 = vmatmul.mubr.msk.f32.gmra.mrb[24].mxu0 %vm310_vm3, %v196_v57  ;;  %v228_v57 = vld [vmem:[%s2279_s25 + $0x1c8] sm:$0xff] }
  0x43   : > { %2132 = vmatmul.mubr.msk.f32.gmra.mrb[24].mxu1 %vm310_vm3, %v260_v58  ;;  %2038 = vmatprep.mubr.msk.f32.mxu0 %vm310_vm3, %v197_v59  ;;  %v292_v58 = vld [vmem:[%s2279_s25 + $0x3c8] sm:$0xff]  ;;  %v229_v59 = vld [vmem:[%s2279_s25 + $0x1d0] sm:$0xff] }
  0x44   : > { %2134 = vmatprep.mubr.msk.f32.mxu1 %vm310_vm3, %v261_v60  ;;  %v293_v60 = vld [vmem:[%s2279_s25 + $0x3d0] sm:$0xff] }
  0x46   : > { %2039 = vmatmul.mubr.msk.f32.gmra.mrb[26].mxu0 %vm310_vm3, %v198_v61  ;;  %v230_v61 = vld [vmem:[%s2279_s25 + $0x1d8] sm:$0xff] }
  0x47   : > { %2135 = vmatmul.mubr.msk.f32.gmra.mrb[26].mxu1 %vm310_vm3, %v262_v62  ;;  %2041 = vmatprep.mubr.msk.f32.mxu0 %vm310_vm3, %v199_v63  ;;  %v294_v62 = vld [vmem:[%s2279_s25 + $0x3d8] sm:$0xff]  ;;  %v231_v63 = vld [vmem:[%s2279_s25 + $0x1e0] sm:$0xff] }
  0x48   : > { %2137 = vmatprep.mubr.msk.f32.mxu1 %vm310_vm3, %v263_v0  ;;  %v295_v0 = vld [vmem:[%s2279_s25 + $0x3e0] sm:$0xff] }
  0x4a   : > { %2042 = vmatmul.mubr.msk.f32.gmra.mrb[28].mxu0 %vm310_vm3, %v200_v1  ;;  %v232_v1 = vld [vmem:[%s2279_s25 + $0x1e8] sm:$0xff] }
  0x4b   : > { %2138 = vmatmul.mubr.msk.f32.gmra.mrb[28].mxu1 %vm310_vm3, %v264_v2  ;;  %2044 = vmatprep.mubr.msk.f32.mxu0 %vm310_vm3, %v201_v3  ;;  %v296_v2 = vld [vmem:[%s2279_s25 + $0x3e8] sm:$0xff]  ;;  %v233_v3 = vld [vmem:[%s2279_s25 + $0x1f0] sm:$0xff] }
  0x4c   : > { %2140 = vmatprep.mubr.msk.f32.mxu1 %vm310_vm3, %v265_v4  ;;  %v297_v4 = vld [vmem:[%s2279_s25 + $0x3f0] sm:$0xff] }
  0x4e   : > { %2045 = vmatmul.mubr.msk.f32.gmra.mrb[30].mxu0 %vm310_vm3, %v202_v5  ;;  %v234_v5 = vld [vmem:[%s2279_s25 + $0x1f8] sm:$0xff] }
  0x4f   : > { %2141 = vmatmul.mubr.msk.f32.gmra.mrb[30].mxu1 %vm310_vm3, %v266_v6  ;;  %2047 = vmatprep.mubr.msk.f32.mxu0 %vm310_vm3, %v203_v7  ;;  %v298_v6 = vld [vmem:[%s2279_s25 + $0x3f8] sm:$0xff]  ;;  %v2544_v7 = vld [vmem:[%s2942_s2] ss:$0 sm:$0xff] }
  0x50   : > { %2143 = vmatprep.mubr.msk.f32.mxu1 %vm310_vm3, %v267_v8 }
  0x52   : > { %2048 = vmatmul.mubr.msk.f32.gmra.mrb[32].mxu0 %vm310_vm3, %v204_v9 }
  0x53   : > { %2144 = vmatmul.mubr.msk.f32.gmra.mrb[32].mxu1 %vm310_vm3, %v268_v10  ;;  %2050 = vmatprep.mubr.msk.f32.mxu0 %vm310_vm3, %v205_v11 }
  0x54   : > { %2146 = vmatprep.mubr.msk.f32.mxu1 %vm310_vm3, %v269_v12 }
  0x56   : > { %2051 = vmatmul.mubr.msk.f32.gmra.mrb[34].mxu0 %vm310_vm3, %v206_v13 }
  0x57   : > { %2147 = vmatmul.mubr.msk.f32.gmra.mrb[34].mxu1 %vm310_vm3, %v270_v14  ;;  %2053 = vmatprep.mubr.msk.f32.mxu0 %vm310_vm3, %v207_v15 }
  0x58   : > { %2149 = vmatprep.mubr.msk.f32.mxu1 %vm310_vm3, %v271_v16 }
  0x5a   : > { %2054 = vmatmul.mubr.msk.f32.gmra.mrb[36].mxu0 %vm310_vm3, %v208_v17 }
  0x5b   : > { %2150 = vmatmul.mubr.msk.f32.gmra.mrb[36].mxu1 %vm310_vm3, %v272_v18  ;;  %2056 = vmatprep.mubr.msk.f32.mxu0 %vm310_vm3, %v209_v19 }
  0x5c   : > { %2152 = vmatprep.mubr.msk.f32.mxu1 %vm310_vm3, %v273_v20 }
  0x5e   : > { %2057 = vmatmul.mubr.msk.f32.gmra.mrb[38].mxu0 %vm310_vm3, %v210_v21 }
  0x5f   : > { %2153 = vmatmul.mubr.msk.f32.gmra.mrb[38].mxu1 %vm310_vm3, %v274_v22  ;;  %2059 = vmatprep.mubr.msk.f32.mxu0 %vm310_vm3, %v211_v23 }
  0x60   : > { %2155 = vmatprep.mubr.msk.f32.mxu1 %vm310_vm3, %v275_v24 }
  0x62   : > { %2060 = vmatmul.mubr.msk.f32.gmra.mrb[40].mxu0 %vm310_vm3, %v212_v25 }
  0x63   : > { %2156 = vmatmul.mubr.msk.f32.gmra.mrb[40].mxu1 %vm310_vm3, %v276_v26  ;;  %2062 = vmatprep.mubr.msk.f32.mxu0 %vm310_vm3, %v213_v27 }
  0x64   : > { %2158 = vmatprep.mubr.msk.f32.mxu1 %vm310_vm3, %v277_v28 }
  0x66   : > { %2063 = vmatmul.mubr.msk.f32.gmra.mrb[42].mxu0 %vm310_vm3, %v214_v29 }
  0x67   : > { %2159 = vmatmul.mubr.msk.f32.gmra.mrb[42].mxu1 %vm310_vm3, %v278_v30  ;;  %2065 = vmatprep.mubr.msk.f32.mxu0 %vm310_vm3, %v215_v31 }
  0x68   : > { %2161 = vmatprep.mubr.msk.f32.mxu1 %vm310_vm3, %v279_v32 }
  0x6a   : > { %2066 = vmatmul.mubr.msk.f32.gmra.mrb[44].mxu0 %vm310_vm3, %v216_v33 }
  0x6b   : > { %2162 = vmatmul.mubr.msk.f32.gmra.mrb[44].mxu1 %vm310_vm3, %v280_v34  ;;  %2068 = vmatprep.mubr.msk.f32.mxu0 %vm310_vm3, %v217_v35 }
  0x6c   : > { %2164 = vmatprep.mubr.msk.f32.mxu1 %vm310_vm3, %v281_v36 }
  0x6e   : > { %2069 = vmatmul.mubr.msk.f32.gmra.mrb[46].mxu0 %vm310_vm3, %v218_v37 }
  0x6f   : > { %2165 = vmatmul.mubr.msk.f32.gmra.mrb[46].mxu1 %vm310_vm3, %v282_v38  ;;  %2071 = vmatprep.mubr.msk.f32.mxu0 %vm310_vm3, %v219_v39 }
  0x70   : > { %2167 = vmatprep.mubr.msk.f32.mxu1 %vm310_vm3, %v283_v40 }
  0x72   : > { %2072 = vmatmul.mubr.msk.f32.gmra.mrb[48].mxu0 %vm310_vm3, %v220_v41 }
  0x73   : > { %2168 = vmatmul.mubr.msk.f32.gmra.mrb[48].mxu1 %vm310_vm3, %v284_v42  ;;  %2074 = vmatprep.mubr.msk.f32.mxu0 %vm310_vm3, %v221_v43 }
  0x74   : > { %2170 = vmatprep.mubr.msk.f32.mxu1 %vm310_vm3, %v285_v44 }
  0x76   : > { %2075 = vmatmul.mubr.msk.f32.gmra.mrb[50].mxu0 %vm310_vm3, %v222_v45 }
  0x77   : > { %2171 = vmatmul.mubr.msk.f32.gmra.mrb[50].mxu1 %vm310_vm3, %v286_v46  ;;  %2077 = vmatprep.mubr.msk.f32.mxu0 %vm310_vm3, %v223_v47 }
  0x78   : > { %2173 = vmatprep.mubr.msk.f32.mxu1 %vm310_vm3, %v287_v48 }
  0x7a   : > { %2078 = vmatmul.mubr.msk.f32.gmra.mrb[52].mxu0 %vm310_vm3, %v224_v49 }
  0x7b   : > { %2174 = vmatmul.mubr.msk.f32.gmra.mrb[52].mxu1 %vm310_vm3, %v288_v50  ;;  %2080 = vmatprep.mubr.msk.f32.mxu0 %vm310_vm3, %v225_v51 }
  0x7c   : > { %2176 = vmatprep.mubr.msk.f32.mxu1 %vm310_vm3, %v289_v52 }
  0x7e   : > { %2081 = vmatmul.mubr.msk.f32.gmra.mrb[54].mxu0 %vm310_vm3, %v226_v53 }
  0x7f   : > { %2177 = vmatmul.mubr.msk.f32.gmra.mrb[54].mxu1 %vm310_vm3, %v290_v54  ;;  %2083 = vmatprep.mubr.msk.f32.mxu0 %vm310_vm3, %v227_v55 }
  0x80   : > { %2179 = vmatprep.mubr.msk.f32.mxu1 %vm310_vm3, %v291_v56 }
  0x82   : > { %2084 = vmatmul.mubr.msk.f32.gmra.mrb[56].mxu0 %vm310_vm3, %v228_v57 }
  0x83   : > { %2180 = vmatmul.mubr.msk.f32.gmra.mrb[56].mxu1 %vm310_vm3, %v292_v58  ;;  %2086 = vmatprep.mubr.msk.f32.mxu0 %vm310_vm3, %v229_v59 }
  0x84   : > { %2182 = vmatprep.mubr.msk.f32.mxu1 %vm310_vm3, %v293_v60 }
  0x86   : > { %2087 = vmatmul.mubr.msk.f32.gmra.mrb[58].mxu0 %vm310_vm3, %v230_v61 }
  0x87   : > { %2183 = vmatmul.mubr.msk.f32.gmra.mrb[58].mxu1 %vm310_vm3, %v294_v62  ;;  %2089 = vmatprep.mubr.msk.f32.mxu0 %vm310_vm3, %v231_v63 }
  0x88   : > { %2185 = vmatprep.mubr.msk.f32.mxu1 %vm310_vm3, %v295_v0 }
  0x8a   : > { %2090 = vmatmul.mubr.msk.f32.gmra.mrb[60].mxu0 %vm310_vm3, %v232_v1 }
  0x8b   : > { %2186 = vmatmul.mubr.msk.f32.gmra.mrb[60].mxu1 %vm310_vm3, %v296_v2  ;;  %2092 = vmatprep.mubr.msk.f32.mxu0 %vm310_vm3, %v233_v3 }
  0x8c   : > { %2188 = vmatprep.mubr.msk.f32.mxu1 %vm310_vm3, %v297_v4 }
  0x8e   : > { %2093 = vmatmul.mubr.msk.f32.gmra.mrb[62].mxu0 %vm310_vm3, %v234_v5 }
  0x8f   : > { %2189 = vmatmul.mubr.msk.f32.gmra.mrb[62].mxu1 %vm310_vm3, %v298_v6 }
  0xe5   : > { %v2001_v8 = vpop.f32.mrb[0].mxu0 }
  0xe6   : > { %v2097_v9 = vpop.f32.mrb[0].mxu1  ;;  %v771_v10 = vadd.f32 %v2001_v8, %v2544_v7  ;;  %v765_v12 = vpop.f32.mrb[1].mxu0 }
  0xe7   : > { %v1091_v11 = vadd.f32 %v2097_v9, %v2544_v7  ;;  %v1085_v13 = vpop.f32.mrb[1].mxu1  ;;  %v766_v14 = vadd.f32 %v2544_v7, %v765_v12 }
  0xe8   : > { %v1086_v15 = vadd.f32 %v2544_v7, %v1085_v13  ;;  %v1405_v16 = vmax.f32 %v771_v10, 0.0 }
  0xe9   : > { %v1469_v17 = vmax.f32 %v1091_v11, 0.0  ;;  %v1404_v18 = vmax.f32 %v766_v14, 0.0  ;;  %v2004_v20 = vpop.f32.mrb[2].mxu0 }
  0xea   : > { %v1468_v19 = vmax.f32 %v1086_v15, 0.0  ;;  %v2100_v21 = vpop.f32.mrb[2].mxu1  ;;  %1534 = vst.msk [vmem:[%s2553_s30 + $0x8] sm:$0xff] %vm1532_vm4, %v1405_v16  ;;  %v781_v22 = vadd.f32 %v2004_v20, %v2544_v7  ;;  %v775_v24 = vpop.f32.mrb[3].mxu0 }
  0xeb   : > { %1598 = vst.msk [vmem:[%s2553_s30 + $0x208] sm:$0xff] %vm1532_vm4, %v1469_v17  ;;  %v1101_v23 = vadd.f32 %v2100_v21, %v2544_v7  ;;  %v1095_v25 = vpop.f32.mrb[3].mxu1  ;;  %1533 = vst.msk [vmem:[%s2553_s30] sm:$0xff] %vm1532_vm4, %v1404_v18  ;;  %v776_v26 = vadd.f32 %v2544_v7, %v775_v24 }
  0xec   : > { %1597 = vst.msk [vmem:[%s2553_s30 + $0x200] sm:$0xff] %vm1532_vm4, %v1468_v19  ;;  %v1096_v27 = vadd.f32 %v2544_v7, %v1095_v25  ;;  %v1407_v28 = vmax.f32 %v781_v22, 0.0 }
  0xed   : > { %v1471_v29 = vmax.f32 %v1101_v23, 0.0  ;;  %v1406_v30 = vmax.f32 %v776_v26, 0.0  ;;  %v2007_v32 = vpop.f32.mrb[4].mxu0 }
  0xee   : > { %v1470_v31 = vmax.f32 %v1096_v27, 0.0  ;;  %v2103_v33 = vpop.f32.mrb[4].mxu1  ;;  %1536 = vst.msk [vmem:[%s2553_s30 + $0x18] sm:$0xff] %vm1532_vm4, %v1407_v28  ;;  %v791_v34 = vadd.f32 %v2007_v32, %v2544_v7  ;;  %v785_v36 = vpop.f32.mrb[5].mxu0 }
  0xef   : > { %1600 = vst.msk [vmem:[%s2553_s30 + $0x218] sm:$0xff] %vm1532_vm4, %v1471_v29  ;;  %v1111_v35 = vadd.f32 %v2103_v33, %v2544_v7  ;;  %v1105_v37 = vpop.f32.mrb[5].mxu1  ;;  %1535 = vst.msk [vmem:[%s2553_s30 + $0x10] sm:$0xff] %vm1532_vm4, %v1406_v30  ;;  %v786_v38 = vadd.f32 %v2544_v7, %v785_v36 }
  0xf0   : > { %1599 = vst.msk [vmem:[%s2553_s30 + $0x210] sm:$0xff] %vm1532_vm4, %v1470_v31  ;;  %v1106_v39 = vadd.f32 %v2544_v7, %v1105_v37  ;;  %v1409_v40 = vmax.f32 %v791_v34, 0.0 }
  0xf1   : > { %v1473_v41 = vmax.f32 %v1111_v35, 0.0  ;;  %v1408_v42 = vmax.f32 %v786_v38, 0.0  ;;  %v2010_v44 = vpop.f32.mrb[6].mxu0 }
  0xf2   : > { %v1472_v43 = vmax.f32 %v1106_v39, 0.0  ;;  %v2106_v45 = vpop.f32.mrb[6].mxu1  ;;  %1538 = vst.msk [vmem:[%s2553_s30 + $0x28] sm:$0xff] %vm1532_vm4, %v1409_v40  ;;  %v801_v46 = vadd.f32 %v2010_v44, %v2544_v7  ;;  %v795_v48 = vpop.f32.mrb[7].mxu0 }
  0xf3   : > { %1602 = vst.msk [vmem:[%s2553_s30 + $0x228] sm:$0xff] %vm1532_vm4, %v1473_v41  ;;  %v1121_v47 = vadd.f32 %v2106_v45, %v2544_v7  ;;  %v1115_v49 = vpop.f32.mrb[7].mxu1  ;;  %1537 = vst.msk [vmem:[%s2553_s30 + $0x20] sm:$0xff] %vm1532_vm4, %v1408_v42  ;;  %v796_v50 = vadd.f32 %v2544_v7, %v795_v48 }
  0xf4   : > { %1601 = vst.msk [vmem:[%s2553_s30 + $0x220] sm:$0xff] %vm1532_vm4, %v1472_v43  ;;  %v1116_v51 = vadd.f32 %v2544_v7, %v1115_v49  ;;  %v1411_v52 = vmax.f32 %v801_v46, 0.0 }
  0xf5   : > { %v1475_v53 = vmax.f32 %v1121_v47, 0.0  ;;  %v1410_v54 = vmax.f32 %v796_v50, 0.0  ;;  %v2013_v56 = vpop.f32.mrb[8].mxu0 }
  0xf6   : > { %v1474_v55 = vmax.f32 %v1116_v51, 0.0  ;;  %v2109_v57 = vpop.f32.mrb[8].mxu1  ;;  %1540 = vst.msk [vmem:[%s2553_s30 + $0x38] sm:$0xff] %vm1532_vm4, %v1411_v52  ;;  %v811_v58 = vadd.f32 %v2013_v56, %v2544_v7  ;;  %v805_v60 = vpop.f32.mrb[9].mxu0 }
  0xf7   : > { %1604 = vst.msk [vmem:[%s2553_s30 + $0x238] sm:$0xff] %vm1532_vm4, %v1475_v53  ;;  %v1131_v59 = vadd.f32 %v2109_v57, %v2544_v7  ;;  %v1125_v61 = vpop.f32.mrb[9].mxu1  ;;  %1539 = vst.msk [vmem:[%s2553_s30 + $0x30] sm:$0xff] %vm1532_vm4, %v1410_v54  ;;  %v806_v62 = vadd.f32 %v2544_v7, %v805_v60 }
  0xf8   : > { %1603 = vst.msk [vmem:[%s2553_s30 + $0x230] sm:$0xff] %vm1532_vm4, %v1474_v55  ;;  %v1126_v63 = vadd.f32 %v2544_v7, %v1125_v61  ;;  %v1413_v0 = vmax.f32 %v811_v58, 0.0 }
  0xf9   : > { %v1477_v1 = vmax.f32 %v1131_v59, 0.0  ;;  %v1412_v2 = vmax.f32 %v806_v62, 0.0  ;;  %v2016_v4 = vpop.f32.mrb[10].mxu0 }
  0xfa   : > { %v1476_v3 = vmax.f32 %v1126_v63, 0.0  ;;  %v2112_v5 = vpop.f32.mrb[10].mxu1  ;;  %1542 = vst.msk [vmem:[%s2553_s30 + $0x48] sm:$0xff] %vm1532_vm4, %v1413_v0  ;;  %v821_v6 = vadd.f32 %v2016_v4, %v2544_v7  ;;  %v815_v9 = vpop.f32.mrb[11].mxu0 }
  0xfb   : > { %1606 = vst.msk [vmem:[%s2553_s30 + $0x248] sm:$0xff] %vm1532_vm4, %v1477_v1  ;;  %v1141_v8 = vadd.f32 %v2112_v5, %v2544_v7  ;;  %v1135_v10 = vpop.f32.mrb[11].mxu1  ;;  %1541 = vst.msk [vmem:[%s2553_s30 + $0x40] sm:$0xff] %vm1532_vm4, %v1412_v2  ;;  %v816_v11 = vadd.f32 %v2544_v7, %v815_v9 }
  0xfc   : > { %1605 = vst.msk [vmem:[%s2553_s30 + $0x240] sm:$0xff] %vm1532_vm4, %v1476_v3  ;;  %v1136_v12 = vadd.f32 %v2544_v7, %v1135_v10  ;;  %v1415_v13 = vmax.f32 %v821_v6, 0.0 }
  0xfd   : > { %v1479_v14 = vmax.f32 %v1141_v8, 0.0  ;;  %v1414_v15 = vmax.f32 %v816_v11, 0.0  ;;  %v2019_v17 = vpop.f32.mrb[12].mxu0 }
  0xfe   : > { %v1478_v16 = vmax.f32 %v1136_v12, 0.0  ;;  %v2115_v18 = vpop.f32.mrb[12].mxu1  ;;  %1544 = vst.msk [vmem:[%s2553_s30 + $0x58] sm:$0xff] %vm1532_vm4, %v1415_v13  ;;  %v831_v19 = vadd.f32 %v2019_v17, %v2544_v7  ;;  %v825_v21 = vpop.f32.mrb[13].mxu0 }
  0xff   : > { %1608 = vst.msk [vmem:[%s2553_s30 + $0x258] sm:$0xff] %vm1532_vm4, %v1479_v14  ;;  %v1151_v20 = vadd.f32 %v2115_v18, %v2544_v7  ;;  %v1145_v22 = vpop.f32.mrb[13].mxu1  ;;  %1543 = vst.msk [vmem:[%s2553_s30 + $0x50] sm:$0xff] %vm1532_vm4, %v1414_v15  ;;  %v826_v23 = vadd.f32 %v2544_v7, %v825_v21 }
 0x100   : > { %1607 = vst.msk [vmem:[%s2553_s30 + $0x250] sm:$0xff] %vm1532_vm4, %v1478_v16  ;;  %v1146_v24 = vadd.f32 %v2544_v7, %v1145_v22  ;;  %v1417_v25 = vmax.f32 %v831_v19, 0.0 }
 0x101   : > { %v1481_v26 = vmax.f32 %v1151_v20, 0.0  ;;  %v1416_v27 = vmax.f32 %v826_v23, 0.0  ;;  %v2022_v29 = vpop.f32.mrb[14].mxu0 }
 0x102   : > { %v1480_v28 = vmax.f32 %v1146_v24, 0.0  ;;  %v2118_v30 = vpop.f32.mrb[14].mxu1  ;;  %1546 = vst.msk [vmem:[%s2553_s30 + $0x68] sm:$0xff] %vm1532_vm4, %v1417_v25  ;;  %v841_v31 = vadd.f32 %v2022_v29, %v2544_v7  ;;  %v835_v33 = vpop.f32.mrb[15].mxu0 }
 0x103   : > { %1610 = vst.msk [vmem:[%s2553_s30 + $0x268] sm:$0xff] %vm1532_vm4, %v1481_v26  ;;  %v1161_v32 = vadd.f32 %v2118_v30, %v2544_v7  ;;  %v1155_v34 = vpop.f32.mrb[15].mxu1  ;;  %1545 = vst.msk [vmem:[%s2553_s30 + $0x60] sm:$0xff] %vm1532_vm4, %v1416_v27  ;;  %v836_v35 = vadd.f32 %v2544_v7, %v835_v33 }
 0x104   : > { %1609 = vst.msk [vmem:[%s2553_s30 + $0x260] sm:$0xff] %vm1532_vm4, %v1480_v28  ;;  %v1156_v36 = vadd.f32 %v2544_v7, %v1155_v34  ;;  %v1419_v37 = vmax.f32 %v841_v31, 0.0 }
 0x105   : > { %v1483_v38 = vmax.f32 %v1161_v32, 0.0  ;;  %v1418_v39 = vmax.f32 %v836_v35, 0.0  ;;  %v2025_v41 = vpop.f32.mrb[16].mxu0 }
 0x106   : > { %v1482_v40 = vmax.f32 %v1156_v36, 0.0  ;;  %v2121_v42 = vpop.f32.mrb[16].mxu1  ;;  %1548 = vst.msk [vmem:[%s2553_s30 + $0x78] sm:$0xff] %vm1532_vm4, %v1419_v37  ;;  %v851_v43 = vadd.f32 %v2025_v41, %v2544_v7  ;;  %v845_v45 = vpop.f32.mrb[17].mxu0 }
 0x107   : > { %1612 = vst.msk [vmem:[%s2553_s30 + $0x278] sm:$0xff] %vm1532_vm4, %v1483_v38  ;;  %v1171_v44 = vadd.f32 %v2121_v42, %v2544_v7  ;;  %v1165_v46 = vpop.f32.mrb[17].mxu1  ;;  %1547 = vst.msk [vmem:[%s2553_s30 + $0x70] sm:$0xff] %vm1532_vm4, %v1418_v39  ;;  %v846_v47 = vadd.f32 %v2544_v7, %v845_v45 }
 0x108   : > { %1611 = vst.msk [vmem:[%s2553_s30 + $0x270] sm:$0xff] %vm1532_vm4, %v1482_v40  ;;  %v1166_v48 = vadd.f32 %v2544_v7, %v1165_v46  ;;  %v1421_v49 = vmax.f32 %v851_v43, 0.0 }
 0x109   : > { %v1485_v50 = vmax.f32 %v1171_v44, 0.0  ;;  %v1420_v51 = vmax.f32 %v846_v47, 0.0  ;;  %v2028_v53 = vpop.f32.mrb[18].mxu0 }
 0x10a   : > { %v1484_v52 = vmax.f32 %v1166_v48, 0.0  ;;  %v2124_v54 = vpop.f32.mrb[18].mxu1  ;;  %1550 = vst.msk [vmem:[%s2553_s30 + $0x88] sm:$0xff] %vm1532_vm4, %v1421_v49  ;;  %v861_v55 = vadd.f32 %v2028_v53, %v2544_v7  ;;  %v855_v57 = vpop.f32.mrb[19].mxu0 }
 0x10b   : > { %1614 = vst.msk [vmem:[%s2553_s30 + $0x288] sm:$0xff] %vm1532_vm4, %v1485_v50  ;;  %v1181_v56 = vadd.f32 %v2124_v54, %v2544_v7  ;;  %v1175_v58 = vpop.f32.mrb[19].mxu1  ;;  %1549 = vst.msk [vmem:[%s2553_s30 + $0x80] sm:$0xff] %vm1532_vm4, %v1420_v51  ;;  %v856_v59 = vadd.f32 %v2544_v7, %v855_v57 }
 0x10c   : > { %1613 = vst.msk [vmem:[%s2553_s30 + $0x280] sm:$0xff] %vm1532_vm4, %v1484_v52  ;;  %v1176_v60 = vadd.f32 %v2544_v7, %v1175_v58  ;;  %v1423_v61 = vmax.f32 %v861_v55, 0.0 }
 0x10d   : > { %v1487_v62 = vmax.f32 %v1181_v56, 0.0  ;;  %v1422_v63 = vmax.f32 %v856_v59, 0.0  ;;  %v2031_v1 = vpop.f32.mrb[20].mxu0 }
 0x10e   : > { %v1486_v0 = vmax.f32 %v1176_v60, 0.0  ;;  %v2127_v2 = vpop.f32.mrb[20].mxu1  ;;  %1552 = vst.msk [vmem:[%s2553_s30 + $0x98] sm:$0xff] %vm1532_vm4, %v1423_v61  ;;  %v871_v3 = vadd.f32 %v2031_v1, %v2544_v7  ;;  %v865_v5 = vpop.f32.mrb[21].mxu0 }
 0x10f   : > { %1616 = vst.msk [vmem:[%s2553_s30 + $0x298] sm:$0xff] %vm1532_vm4, %v1487_v62  ;;  %v1191_v4 = vadd.f32 %v2127_v2, %v2544_v7  ;;  %v1185_v6 = vpop.f32.mrb[21].mxu1  ;;  %1551 = vst.msk [vmem:[%s2553_s30 + $0x90] sm:$0xff] %vm1532_vm4, %v1422_v63  ;;  %v866_v8 = vadd.f32 %v2544_v7, %v865_v5 }
 0x110   : > { %1615 = vst.msk [vmem:[%s2553_s30 + $0x290] sm:$0xff] %vm1532_vm4, %v1486_v0  ;;  %v1186_v9 = vadd.f32 %v2544_v7, %v1185_v6  ;;  %v1425_v10 = vmax.f32 %v871_v3, 0.0 }
 0x111   : > { %v1489_v11 = vmax.f32 %v1191_v4, 0.0  ;;  %v1424_v12 = vmax.f32 %v866_v8, 0.0  ;;  %v2034_v14 = vpop.f32.mrb[22].mxu0 }
 0x112   : > { %v1488_v13 = vmax.f32 %v1186_v9, 0.0  ;;  %v2130_v15 = vpop.f32.mrb[22].mxu1  ;;  %1554 = vst.msk [vmem:[%s2553_s30 + $0xa8] sm:$0xff] %vm1532_vm4, %v1425_v10  ;;  %v881_v16 = vadd.f32 %v2034_v14, %v2544_v7  ;;  %v875_v18 = vpop.f32.mrb[23].mxu0 }
 0x113   : > { %1618 = vst.msk [vmem:[%s2553_s30 + $0x2a8] sm:$0xff] %vm1532_vm4, %v1489_v11  ;;  %v1201_v17 = vadd.f32 %v2130_v15, %v2544_v7  ;;  %v1195_v19 = vpop.f32.mrb[23].mxu1  ;;  %1553 = vst.msk [vmem:[%s2553_s30 + $0xa0] sm:$0xff] %vm1532_vm4, %v1424_v12  ;;  %v876_v20 = vadd.f32 %v2544_v7, %v875_v18 }
 0x114   : > { %1617 = vst.msk [vmem:[%s2553_s30 + $0x2a0] sm:$0xff] %vm1532_vm4, %v1488_v13  ;;  %v1196_v21 = vadd.f32 %v2544_v7, %v1195_v19  ;;  %v1427_v22 = vmax.f32 %v881_v16, 0.0 }
 0x115   : > { %v1491_v23 = vmax.f32 %v1201_v17, 0.0  ;;  %v1426_v24 = vmax.f32 %v876_v20, 0.0  ;;  %v2037_v26 = vpop.f32.mrb[24].mxu0 }
 0x116   : > { %v1490_v25 = vmax.f32 %v1196_v21, 0.0  ;;  %v2133_v27 = vpop.f32.mrb[24].mxu1  ;;  %1556 = vst.msk [vmem:[%s2553_s30 + $0xb8] sm:$0xff] %vm1532_vm4, %v1427_v22  ;;  %v891_v28 = vadd.f32 %v2037_v26, %v2544_v7  ;;  %v885_v30 = vpop.f32.mrb[25].mxu0 }
 0x117   : > { %1620 = vst.msk [vmem:[%s2553_s30 + $0x2b8] sm:$0xff] %vm1532_vm4, %v1491_v23  ;;  %v1211_v29 = vadd.f32 %v2133_v27, %v2544_v7  ;;  %v1205_v31 = vpop.f32.mrb[25].mxu1  ;;  %1555 = vst.msk [vmem:[%s2553_s30 + $0xb0] sm:$0xff] %vm1532_vm4, %v1426_v24  ;;  %v886_v32 = vadd.f32 %v2544_v7, %v885_v30 }
 0x118   : > { %1619 = vst.msk [vmem:[%s2553_s30 + $0x2b0] sm:$0xff] %vm1532_vm4, %v1490_v25  ;;  %v1206_v33 = vadd.f32 %v2544_v7, %v1205_v31  ;;  %v1429_v34 = vmax.f32 %v891_v28, 0.0 }
 0x119   : > { %v1493_v35 = vmax.f32 %v1211_v29, 0.0  ;;  %v1428_v36 = vmax.f32 %v886_v32, 0.0  ;;  %v2040_v38 = vpop.f32.mrb[26].mxu0 }
 0x11a   : > { %v1492_v37 = vmax.f32 %v1206_v33, 0.0  ;;  %v2136_v39 = vpop.f32.mrb[26].mxu1  ;;  %1558 = vst.msk [vmem:[%s2553_s30 + $0xc8] sm:$0xff] %vm1532_vm4, %v1429_v34  ;;  %v901_v40 = vadd.f32 %v2040_v38, %v2544_v7  ;;  %v895_v42 = vpop.f32.mrb[27].mxu0 }
 0x11b   : > { %1622 = vst.msk [vmem:[%s2553_s30 + $0x2c8] sm:$0xff] %vm1532_vm4, %v1493_v35  ;;  %v1221_v41 = vadd.f32 %v2136_v39, %v2544_v7  ;;  %v1215_v43 = vpop.f32.mrb[27].mxu1  ;;  %1557 = vst.msk [vmem:[%s2553_s30 + $0xc0] sm:$0xff] %vm1532_vm4, %v1428_v36  ;;  %v896_v44 = vadd.f32 %v2544_v7, %v895_v42 }
 0x11c   : > { %1621 = vst.msk [vmem:[%s2553_s30 + $0x2c0] sm:$0xff] %vm1532_vm4, %v1492_v37  ;;  %v1216_v45 = vadd.f32 %v2544_v7, %v1215_v43  ;;  %v1431_v46 = vmax.f32 %v901_v40, 0.0 }
 0x11d   : > { %v1495_v47 = vmax.f32 %v1221_v41, 0.0  ;;  %v1430_v48 = vmax.f32 %v896_v44, 0.0  ;;  %v2043_v50 = vpop.f32.mrb[28].mxu0 }
 0x11e   : > { %v1494_v49 = vmax.f32 %v1216_v45, 0.0  ;;  %v2139_v51 = vpop.f32.mrb[28].mxu1  ;;  %1560 = vst.msk [vmem:[%s2553_s30 + $0xd8] sm:$0xff] %vm1532_vm4, %v1431_v46  ;;  %v911_v52 = vadd.f32 %v2043_v50, %v2544_v7  ;;  %v905_v54 = vpop.f32.mrb[29].mxu0 }
 0x11f   : > { %1624 = vst.msk [vmem:[%s2553_s30 + $0x2d8] sm:$0xff] %vm1532_vm4, %v1495_v47  ;;  %v1231_v53 = vadd.f32 %v2139_v51, %v2544_v7  ;;  %v1225_v55 = vpop.f32.mrb[29].mxu1  ;;  %1559 = vst.msk [vmem:[%s2553_s30 + $0xd0] sm:$0xff] %vm1532_vm4, %v1430_v48  ;;  %v906_v56 = vadd.f32 %v2544_v7, %v905_v54 }
 0x120   : > { %1623 = vst.msk [vmem:[%s2553_s30 + $0x2d0] sm:$0xff] %vm1532_vm4, %v1494_v49  ;;  %v1226_v57 = vadd.f32 %v2544_v7, %v1225_v55  ;;  %v1433_v58 = vmax.f32 %v911_v52, 0.0 }
 0x121   : > { %v1497_v59 = vmax.f32 %v1231_v53, 0.0  ;;  %v1432_v60 = vmax.f32 %v906_v56, 0.0  ;;  %v2046_v62 = vpop.f32.mrb[30].mxu0 }
 0x122   : > { %v1496_v61 = vmax.f32 %v1226_v57, 0.0  ;;  %v2142_v63 = vpop.f32.mrb[30].mxu1  ;;  %1562 = vst.msk [vmem:[%s2553_s30 + $0xe8] sm:$0xff] %vm1532_vm4, %v1433_v58  ;;  %v921_v0 = vadd.f32 %v2046_v62, %v2544_v7  ;;  %v915_v2 = vpop.f32.mrb[31].mxu0 }
 0x123   : > { %1626 = vst.msk [vmem:[%s2553_s30 + $0x2e8] sm:$0xff] %vm1532_vm4, %v1497_v59  ;;  %v1241_v1 = vadd.f32 %v2142_v63, %v2544_v7  ;;  %v1235_v3 = vpop.f32.mrb[31].mxu1  ;;  %1561 = vst.msk [vmem:[%s2553_s30 + $0xe0] sm:$0xff] %vm1532_vm4, %v1432_v60  ;;  %v916_v4 = vadd.f32 %v2544_v7, %v915_v2 }
 0x124   : > { %1625 = vst.msk [vmem:[%s2553_s30 + $0x2e0] sm:$0xff] %vm1532_vm4, %v1496_v61  ;;  %v1236_v5 = vadd.f32 %v2544_v7, %v1235_v3  ;;  %v1435_v6 = vmax.f32 %v921_v0, 0.0 }
 0x125   : > { %v1499_v8 = vmax.f32 %v1241_v1, 0.0  ;;  %v1434_v9 = vmax.f32 %v916_v4, 0.0  ;;  %v2049_v11 = vpop.f32.mrb[32].mxu0 }
 0x126   : > { %v1498_v10 = vmax.f32 %v1236_v5, 0.0  ;;  %v2145_v12 = vpop.f32.mrb[32].mxu1  ;;  %1564 = vst.msk [vmem:[%s2553_s30 + $0xf8] sm:$0xff] %vm1532_vm4, %v1435_v6  ;;  %v931_v13 = vadd.f32 %v2049_v11, %v2544_v7  ;;  %v925_v15 = vpop.f32.mrb[33].mxu0 }
 0x127   : > { %1628 = vst.msk [vmem:[%s2553_s30 + $0x2f8] sm:$0xff] %vm1532_vm4, %v1499_v8  ;;  %v1251_v14 = vadd.f32 %v2145_v12, %v2544_v7  ;;  %v1245_v16 = vpop.f32.mrb[33].mxu1  ;;  %1563 = vst.msk [vmem:[%s2553_s30 + $0xf0] sm:$0xff] %vm1532_vm4, %v1434_v9  ;;  %v926_v17 = vadd.f32 %v2544_v7, %v925_v15 }
 0x128   : > { %1627 = vst.msk [vmem:[%s2553_s30 + $0x2f0] sm:$0xff] %vm1532_vm4, %v1498_v10  ;;  %v1246_v18 = vadd.f32 %v2544_v7, %v1245_v16  ;;  %v1437_v19 = vmax.f32 %v931_v13, 0.0 }
 0x129   : > { %v1501_v20 = vmax.f32 %v1251_v14, 0.0  ;;  %v1436_v21 = vmax.f32 %v926_v17, 0.0  ;;  %v2052_v23 = vpop.f32.mrb[34].mxu0 }
 0x12a   : > { %v1500_v22 = vmax.f32 %v1246_v18, 0.0  ;;  %v2148_v24 = vpop.f32.mrb[34].mxu1  ;;  %1566 = vst.msk [vmem:[%s2553_s30 + $0x108] sm:$0xff] %vm1532_vm4, %v1437_v19  ;;  %v941_v25 = vadd.f32 %v2052_v23, %v2544_v7  ;;  %v935_v27 = vpop.f32.mrb[35].mxu0 }
 0x12b   : > { %1630 = vst.msk [vmem:[%s2553_s30 + $0x308] sm:$0xff] %vm1532_vm4, %v1501_v20  ;;  %v1261_v26 = vadd.f32 %v2148_v24, %v2544_v7  ;;  %v1255_v28 = vpop.f32.mrb[35].mxu1  ;;  %1565 = vst.msk [vmem:[%s2553_s30 + $0x100] sm:$0xff] %vm1532_vm4, %v1436_v21  ;;  %v936_v29 = vadd.f32 %v2544_v7, %v935_v27 }
 0x12c   : > { %1629 = vst.msk [vmem:[%s2553_s30 + $0x300] sm:$0xff] %vm1532_vm4, %v1500_v22  ;;  %v1256_v30 = vadd.f32 %v2544_v7, %v1255_v28  ;;  %v1439_v31 = vmax.f32 %v941_v25, 0.0 }
 0x12d   : > { %v1503_v32 = vmax.f32 %v1261_v26, 0.0  ;;  %v1438_v33 = vmax.f32 %v936_v29, 0.0  ;;  %v2055_v35 = vpop.f32.mrb[36].mxu0 }
 0x12e   : > { %v1502_v34 = vmax.f32 %v1256_v30, 0.0  ;;  %v2151_v36 = vpop.f32.mrb[36].mxu1  ;;  %1568 = vst.msk [vmem:[%s2553_s30 + $0x118] sm:$0xff] %vm1532_vm4, %v1439_v31  ;;  %v951_v37 = vadd.f32 %v2055_v35, %v2544_v7  ;;  %v945_v39 = vpop.f32.mrb[37].mxu0 }
 0x12f   : > { %1632 = vst.msk [vmem:[%s2553_s30 + $0x318] sm:$0xff] %vm1532_vm4, %v1503_v32  ;;  %v1271_v38 = vadd.f32 %v2151_v36, %v2544_v7  ;;  %v1265_v40 = vpop.f32.mrb[37].mxu1  ;;  %1567 = vst.msk [vmem:[%s2553_s30 + $0x110] sm:$0xff] %vm1532_vm4, %v1438_v33  ;;  %v946_v41 = vadd.f32 %v2544_v7, %v945_v39 }
 0x130   : > { %1631 = vst.msk [vmem:[%s2553_s30 + $0x310] sm:$0xff] %vm1532_vm4, %v1502_v34  ;;  %v1266_v42 = vadd.f32 %v2544_v7, %v1265_v40  ;;  %v1441_v43 = vmax.f32 %v951_v37, 0.0 }
 0x131   : > { %v1505_v44 = vmax.f32 %v1271_v38, 0.0  ;;  %v1440_v45 = vmax.f32 %v946_v41, 0.0  ;;  %v2058_v47 = vpop.f32.mrb[38].mxu0 }
 0x132   : > { %v1504_v46 = vmax.f32 %v1266_v42, 0.0  ;;  %v2154_v48 = vpop.f32.mrb[38].mxu1  ;;  %1570 = vst.msk [vmem:[%s2553_s30 + $0x128] sm:$0xff] %vm1532_vm4, %v1441_v43  ;;  %v961_v49 = vadd.f32 %v2058_v47, %v2544_v7  ;;  %v955_v51 = vpop.f32.mrb[39].mxu0 }
 0x133   : > { %1634 = vst.msk [vmem:[%s2553_s30 + $0x328] sm:$0xff] %vm1532_vm4, %v1505_v44  ;;  %v1281_v50 = vadd.f32 %v2154_v48, %v2544_v7  ;;  %v1275_v52 = vpop.f32.mrb[39].mxu1  ;;  %1569 = vst.msk [vmem:[%s2553_s30 + $0x120] sm:$0xff] %vm1532_vm4, %v1440_v45  ;;  %v956_v53 = vadd.f32 %v2544_v7, %v955_v51 }
 0x134   : > { %1633 = vst.msk [vmem:[%s2553_s30 + $0x320] sm:$0xff] %vm1532_vm4, %v1504_v46  ;;  %v1276_v54 = vadd.f32 %v2544_v7, %v1275_v52  ;;  %v1443_v55 = vmax.f32 %v961_v49, 0.0 }
 0x135   : > { %v1507_v56 = vmax.f32 %v1281_v50, 0.0  ;;  %v1442_v57 = vmax.f32 %v956_v53, 0.0  ;;  %v2061_v59 = vpop.f32.mrb[40].mxu0 }
 0x136   : > { %v1506_v58 = vmax.f32 %v1276_v54, 0.0  ;;  %v2157_v60 = vpop.f32.mrb[40].mxu1  ;;  %1572 = vst.msk [vmem:[%s2553_s30 + $0x138] sm:$0xff] %vm1532_vm4, %v1443_v55  ;;  %v971_v61 = vadd.f32 %v2061_v59, %v2544_v7  ;;  %v965_v63 = vpop.f32.mrb[41].mxu0 }
 0x137   : > { %1636 = vst.msk [vmem:[%s2553_s30 + $0x338] sm:$0xff] %vm1532_vm4, %v1507_v56  ;;  %v1291_v62 = vadd.f32 %v2157_v60, %v2544_v7  ;;  %v1285_v0 = vpop.f32.mrb[41].mxu1  ;;  %1571 = vst.msk [vmem:[%s2553_s30 + $0x130] sm:$0xff] %vm1532_vm4, %v1442_v57  ;;  %v966_v1 = vadd.f32 %v2544_v7, %v965_v63 }
 0x138   : > { %1635 = vst.msk [vmem:[%s2553_s30 + $0x330] sm:$0xff] %vm1532_vm4, %v1506_v58  ;;  %v1286_v2 = vadd.f32 %v2544_v7, %v1285_v0  ;;  %v1445_v3 = vmax.f32 %v971_v61, 0.0 }
 0x139   : > { %v1509_v4 = vmax.f32 %v1291_v62, 0.0  ;;  %v1444_v5 = vmax.f32 %v966_v1, 0.0  ;;  %v2064_v8 = vpop.f32.mrb[42].mxu0 }
 0x13a   : > { %v1508_v6 = vmax.f32 %v1286_v2, 0.0  ;;  %v2160_v9 = vpop.f32.mrb[42].mxu1  ;;  %1574 = vst.msk [vmem:[%s2553_s30 + $0x148] sm:$0xff] %vm1532_vm4, %v1445_v3  ;;  %v981_v10 = vadd.f32 %v2064_v8, %v2544_v7  ;;  %v975_v12 = vpop.f32.mrb[43].mxu0 }
 0x13b   : > { %1638 = vst.msk [vmem:[%s2553_s30 + $0x348] sm:$0xff] %vm1532_vm4, %v1509_v4  ;;  %v1301_v11 = vadd.f32 %v2160_v9, %v2544_v7  ;;  %v1295_v13 = vpop.f32.mrb[43].mxu1  ;;  %1573 = vst.msk [vmem:[%s2553_s30 + $0x140] sm:$0xff] %vm1532_vm4, %v1444_v5  ;;  %v976_v14 = vadd.f32 %v2544_v7, %v975_v12 }
 0x13c   : > { %1637 = vst.msk [vmem:[%s2553_s30 + $0x340] sm:$0xff] %vm1532_vm4, %v1508_v6  ;;  %v1296_v15 = vadd.f32 %v2544_v7, %v1295_v13  ;;  %v1447_v16 = vmax.f32 %v981_v10, 0.0 }
 0x13d   : > { %v1511_v17 = vmax.f32 %v1301_v11, 0.0  ;;  %v1446_v18 = vmax.f32 %v976_v14, 0.0  ;;  %v2067_v20 = vpop.f32.mrb[44].mxu0 }
 0x13e   : > { %v1510_v19 = vmax.f32 %v1296_v15, 0.0  ;;  %v2163_v21 = vpop.f32.mrb[44].mxu1  ;;  %1576 = vst.msk [vmem:[%s2553_s30 + $0x158] sm:$0xff] %vm1532_vm4, %v1447_v16  ;;  %v991_v22 = vadd.f32 %v2067_v20, %v2544_v7  ;;  %v985_v24 = vpop.f32.mrb[45].mxu0 }
 0x13f   : > { %1640 = vst.msk [vmem:[%s2553_s30 + $0x358] sm:$0xff] %vm1532_vm4, %v1511_v17  ;;  %v1311_v23 = vadd.f32 %v2163_v21, %v2544_v7  ;;  %v1305_v25 = vpop.f32.mrb[45].mxu1  ;;  %1575 = vst.msk [vmem:[%s2553_s30 + $0x150] sm:$0xff] %vm1532_vm4, %v1446_v18  ;;  %v986_v26 = vadd.f32 %v2544_v7, %v985_v24 }
 0x140   : > { %1639 = vst.msk [vmem:[%s2553_s30 + $0x350] sm:$0xff] %vm1532_vm4, %v1510_v19  ;;  %v1306_v27 = vadd.f32 %v2544_v7, %v1305_v25  ;;  %v1449_v28 = vmax.f32 %v991_v22, 0.0 }
 0x141   : > { %v1513_v29 = vmax.f32 %v1311_v23, 0.0  ;;  %v1448_v30 = vmax.f32 %v986_v26, 0.0  ;;  %v2070_v32 = vpop.f32.mrb[46].mxu0 }
 0x142   : > { %v1512_v31 = vmax.f32 %v1306_v27, 0.0  ;;  %v2166_v33 = vpop.f32.mrb[46].mxu1  ;;  %1578 = vst.msk [vmem:[%s2553_s30 + $0x168] sm:$0xff] %vm1532_vm4, %v1449_v28  ;;  %v1001_v34 = vadd.f32 %v2070_v32, %v2544_v7  ;;  %v995_v36 = vpop.f32.mrb[47].mxu0 }
 0x143   : > { %1642 = vst.msk [vmem:[%s2553_s30 + $0x368] sm:$0xff] %vm1532_vm4, %v1513_v29  ;;  %v1321_v35 = vadd.f32 %v2166_v33, %v2544_v7  ;;  %v1315_v37 = vpop.f32.mrb[47].mxu1  ;;  %1577 = vst.msk [vmem:[%s2553_s30 + $0x160] sm:$0xff] %vm1532_vm4, %v1448_v30  ;;  %v996_v38 = vadd.f32 %v2544_v7, %v995_v36 }
 0x144   : > { %1641 = vst.msk [vmem:[%s2553_s30 + $0x360] sm:$0xff] %vm1532_vm4, %v1512_v31  ;;  %v1316_v39 = vadd.f32 %v2544_v7, %v1315_v37  ;;  %v1451_v40 = vmax.f32 %v1001_v34, 0.0 }
 0x145   : > { %v1515_v41 = vmax.f32 %v1321_v35, 0.0  ;;  %v1450_v42 = vmax.f32 %v996_v38, 0.0  ;;  %v2073_v44 = vpop.f32.mrb[48].mxu0 }
 0x146   : > { %v1514_v43 = vmax.f32 %v1316_v39, 0.0  ;;  %v2169_v45 = vpop.f32.mrb[48].mxu1  ;;  %1580 = vst.msk [vmem:[%s2553_s30 + $0x178] sm:$0xff] %vm1532_vm4, %v1451_v40  ;;  %v1011_v46 = vadd.f32 %v2073_v44, %v2544_v7  ;;  %v1005_v48 = vpop.f32.mrb[49].mxu0 }
 0x147   : > { %1644 = vst.msk [vmem:[%s2553_s30 + $0x378] sm:$0xff] %vm1532_vm4, %v1515_v41  ;;  %v1331_v47 = vadd.f32 %v2169_v45, %v2544_v7  ;;  %v1325_v49 = vpop.f32.mrb[49].mxu1  ;;  %1579 = vst.msk [vmem:[%s2553_s30 + $0x170] sm:$0xff] %vm1532_vm4, %v1450_v42  ;;  %v1006_v50 = vadd.f32 %v2544_v7, %v1005_v48 }
 0x148   : > { %1643 = vst.msk [vmem:[%s2553_s30 + $0x370] sm:$0xff] %vm1532_vm4, %v1514_v43  ;;  %v1326_v51 = vadd.f32 %v2544_v7, %v1325_v49  ;;  %v1453_v52 = vmax.f32 %v1011_v46, 0.0 }
 0x149   : > { %v1517_v53 = vmax.f32 %v1331_v47, 0.0  ;;  %v1452_v54 = vmax.f32 %v1006_v50, 0.0  ;;  %v2076_v56 = vpop.f32.mrb[50].mxu0 }
 0x14a   : > { %v1516_v55 = vmax.f32 %v1326_v51, 0.0  ;;  %v2172_v57 = vpop.f32.mrb[50].mxu1  ;;  %1582 = vst.msk [vmem:[%s2553_s30 + $0x188] sm:$0xff] %vm1532_vm4, %v1453_v52  ;;  %v1021_v58 = vadd.f32 %v2076_v56, %v2544_v7  ;;  %v1015_v60 = vpop.f32.mrb[51].mxu0 }
 0x14b   : > { %1646 = vst.msk [vmem:[%s2553_s30 + $0x388] sm:$0xff] %vm1532_vm4, %v1517_v53  ;;  %v1341_v59 = vadd.f32 %v2172_v57, %v2544_v7  ;;  %v1335_v61 = vpop.f32.mrb[51].mxu1  ;;  %1581 = vst.msk [vmem:[%s2553_s30 + $0x180] sm:$0xff] %vm1532_vm4, %v1452_v54  ;;  %v1016_v62 = vadd.f32 %v2544_v7, %v1015_v60 }
 0x14c   : > { %1645 = vst.msk [vmem:[%s2553_s30 + $0x380] sm:$0xff] %vm1532_vm4, %v1516_v55  ;;  %v1336_v63 = vadd.f32 %v2544_v7, %v1335_v61  ;;  %v1455_v0 = vmax.f32 %v1021_v58, 0.0 }
 0x14d   : > { %v1519_v1 = vmax.f32 %v1341_v59, 0.0  ;;  %v1454_v2 = vmax.f32 %v1016_v62, 0.0  ;;  %v2079_v4 = vpop.f32.mrb[52].mxu0 }
 0x14e   : > { %v1518_v3 = vmax.f32 %v1336_v63, 0.0  ;;  %v2175_v5 = vpop.f32.mrb[52].mxu1  ;;  %1584 = vst.msk [vmem:[%s2553_s30 + $0x198] sm:$0xff] %vm1532_vm4, %v1455_v0  ;;  %v1031_v6 = vadd.f32 %v2079_v4, %v2544_v7  ;;  %v1025_v9 = vpop.f32.mrb[53].mxu0 }
 0x14f   : > { %1648 = vst.msk [vmem:[%s2553_s30 + $0x398] sm:$0xff] %vm1532_vm4, %v1519_v1  ;;  %v1351_v8 = vadd.f32 %v2175_v5, %v2544_v7  ;;  %v1345_v10 = vpop.f32.mrb[53].mxu1  ;;  %1583 = vst.msk [vmem:[%s2553_s30 + $0x190] sm:$0xff] %vm1532_vm4, %v1454_v2  ;;  %v1026_v11 = vadd.f32 %v2544_v7, %v1025_v9 }
 0x150   : > { %1647 = vst.msk [vmem:[%s2553_s30 + $0x390] sm:$0xff] %vm1532_vm4, %v1518_v3  ;;  %v1346_v12 = vadd.f32 %v2544_v7, %v1345_v10  ;;  %v1457_v13 = vmax.f32 %v1031_v6, 0.0 }
 0x151   : > { %v1521_v14 = vmax.f32 %v1351_v8, 0.0  ;;  %v1456_v15 = vmax.f32 %v1026_v11, 0.0  ;;  %v2082_v17 = vpop.f32.mrb[54].mxu0 }
 0x152   : > { %v1520_v16 = vmax.f32 %v1346_v12, 0.0  ;;  %v2178_v18 = vpop.f32.mrb[54].mxu1  ;;  %1586 = vst.msk [vmem:[%s2553_s30 + $0x1a8] sm:$0xff] %vm1532_vm4, %v1457_v13  ;;  %v1041_v19 = vadd.f32 %v2082_v17, %v2544_v7  ;;  %v1035_v21 = vpop.f32.mrb[55].mxu0 }
 0x153   : > { %1650 = vst.msk [vmem:[%s2553_s30 + $0x3a8] sm:$0xff] %vm1532_vm4, %v1521_v14  ;;  %v1361_v20 = vadd.f32 %v2178_v18, %v2544_v7  ;;  %v1355_v22 = vpop.f32.mrb[55].mxu1  ;;  %1585 = vst.msk [vmem:[%s2553_s30 + $0x1a0] sm:$0xff] %vm1532_vm4, %v1456_v15  ;;  %v1036_v23 = vadd.f32 %v2544_v7, %v1035_v21 }
 0x154   : > { %1649 = vst.msk [vmem:[%s2553_s30 + $0x3a0] sm:$0xff] %vm1532_vm4, %v1520_v16  ;;  %v1356_v24 = vadd.f32 %v2544_v7, %v1355_v22  ;;  %v1459_v25 = vmax.f32 %v1041_v19, 0.0 }
 0x155   : > { %v1523_v26 = vmax.f32 %v1361_v20, 0.0  ;;  %v1458_v27 = vmax.f32 %v1036_v23, 0.0  ;;  %v2085_v29 = vpop.f32.mrb[56].mxu0 }
 0x156   : > { %v1522_v28 = vmax.f32 %v1356_v24, 0.0  ;;  %v2181_v30 = vpop.f32.mrb[56].mxu1  ;;  %1588 = vst.msk [vmem:[%s2553_s30 + $0x1b8] sm:$0xff] %vm1532_vm4, %v1459_v25  ;;  %v1051_v31 = vadd.f32 %v2085_v29, %v2544_v7  ;;  %v1045_v33 = vpop.f32.mrb[57].mxu0 }
 0x157   : > { %1652 = vst.msk [vmem:[%s2553_s30 + $0x3b8] sm:$0xff] %vm1532_vm4, %v1523_v26  ;;  %v1371_v32 = vadd.f32 %v2181_v30, %v2544_v7  ;;  %v1365_v34 = vpop.f32.mrb[57].mxu1  ;;  %1587 = vst.msk [vmem:[%s2553_s30 + $0x1b0] sm:$0xff] %vm1532_vm4, %v1458_v27  ;;  %v1046_v35 = vadd.f32 %v2544_v7, %v1045_v33 }
 0x158   : > { %1651 = vst.msk [vmem:[%s2553_s30 + $0x3b0] sm:$0xff] %vm1532_vm4, %v1522_v28  ;;  %v1366_v36 = vadd.f32 %v2544_v7, %v1365_v34  ;;  %v1461_v37 = vmax.f32 %v1051_v31, 0.0 }
 0x159   : > { %v1525_v38 = vmax.f32 %v1371_v32, 0.0  ;;  %v1460_v39 = vmax.f32 %v1046_v35, 0.0  ;;  %v2088_v41 = vpop.f32.mrb[58].mxu0 }
 0x15a   : > { %v1524_v40 = vmax.f32 %v1366_v36, 0.0  ;;  %v2184_v42 = vpop.f32.mrb[58].mxu1  ;;  %1590 = vst.msk [vmem:[%s2553_s30 + $0x1c8] sm:$0xff] %vm1532_vm4, %v1461_v37  ;;  %v1061_v43 = vadd.f32 %v2088_v41, %v2544_v7  ;;  %v1055_v45 = vpop.f32.mrb[59].mxu0 }
 0x15b   : > { %1654 = vst.msk [vmem:[%s2553_s30 + $0x3c8] sm:$0xff] %vm1532_vm4, %v1525_v38  ;;  %v1381_v44 = vadd.f32 %v2184_v42, %v2544_v7  ;;  %v1375_v46 = vpop.f32.mrb[59].mxu1  ;;  %1589 = vst.msk [vmem:[%s2553_s30 + $0x1c0] sm:$0xff] %vm1532_vm4, %v1460_v39  ;;  %v1056_v47 = vadd.f32 %v2544_v7, %v1055_v45 }
 0x15c   : > { %1653 = vst.msk [vmem:[%s2553_s30 + $0x3c0] sm:$0xff] %vm1532_vm4, %v1524_v40  ;;  %v1376_v48 = vadd.f32 %v2544_v7, %v1375_v46  ;;  %v1463_v49 = vmax.f32 %v1061_v43, 0.0 }
 0x15d   : > { %v1527_v50 = vmax.f32 %v1381_v44, 0.0  ;;  %v1462_v51 = vmax.f32 %v1056_v47, 0.0  ;;  %v2091_v53 = vpop.f32.mrb[60].mxu0 }
 0x15e   : > { %v1526_v52 = vmax.f32 %v1376_v48, 0.0  ;;  %v2187_v54 = vpop.f32.mrb[60].mxu1  ;;  %1592 = vst.msk [vmem:[%s2553_s30 + $0x1d8] sm:$0xff] %vm1532_vm4, %v1463_v49  ;;  %v1071_v55 = vadd.f32 %v2091_v53, %v2544_v7  ;;  %v1065_v57 = vpop.f32.mrb[61].mxu0 }
 0x15f   : > { %1656 = vst.msk [vmem:[%s2553_s30 + $0x3d8] sm:$0xff] %vm1532_vm4, %v1527_v50  ;;  %v1391_v56 = vadd.f32 %v2187_v54, %v2544_v7  ;;  %v1385_v58 = vpop.f32.mrb[61].mxu1  ;;  %1591 = vst.msk [vmem:[%s2553_s30 + $0x1d0] sm:$0xff] %vm1532_vm4, %v1462_v51  ;;  %v1066_v59 = vadd.f32 %v2544_v7, %v1065_v57 }
 0x160   : > { %1655 = vst.msk [vmem:[%s2553_s30 + $0x3d0] sm:$0xff] %vm1532_vm4, %v1526_v52  ;;  %v1386_v60 = vadd.f32 %v2544_v7, %v1385_v58  ;;  %v1465_v61 = vmax.f32 %v1071_v55, 0.0 }
 0x161   : > { %v1529_v62 = vmax.f32 %v1391_v56, 0.0  ;;  %v1464_v63 = vmax.f32 %v1066_v59, 0.0  ;;  %v2094_v1 = vpop.f32.mrb[62].mxu0 }
 0x162   : > { %v1528_v0 = vmax.f32 %v1386_v60, 0.0  ;;  %v2190_v2 = vpop.f32.mrb[62].mxu1  ;;  %1594 = vst.msk [vmem:[%s2553_s30 + $0x1e8] sm:$0xff] %vm1532_vm4, %v1465_v61  ;;  %v1081_v3 = vadd.f32 %v2094_v1, %v2544_v7  ;;  %v1075_v5 = vpop.f32.mrb[63].mxu0 }
 0x163   : > { %1658 = vst.msk [vmem:[%s2553_s30 + $0x3e8] sm:$0xff] %vm1532_vm4, %v1529_v62  ;;  %v1401_v4 = vadd.f32 %v2190_v2, %v2544_v7  ;;  %v1395_v6 = vpop.f32.mrb[63].mxu1  ;;  %1593 = vst.msk [vmem:[%s2553_s30 + $0x1e0] sm:$0xff] %vm1532_vm4, %v1464_v63  ;;  %v1076_v8 = vadd.f32 %v2544_v7, %v1075_v5 }
 0x164   : > { %1657 = vst.msk [vmem:[%s2553_s30 + $0x3e0] sm:$0xff] %vm1532_vm4, %v1528_v0  ;;  %v1396_v9 = vadd.f32 %v2544_v7, %v1395_v6  ;;  %v1467_v10 = vmax.f32 %v1081_v3, 0.0 }
 0x165   : > { %v1531_v11 = vmax.f32 %v1401_v4, 0.0  ;;  %v1466_v12 = vmax.f32 %v1076_v8, 0.0 }
 0x166   : > { %v1530_v13 = vmax.f32 %v1396_v9, 0.0  ;;  %1596 = vst.msk [vmem:[%s2553_s30 + $0x1f8] sm:$0xff] %vm1532_vm4, %v1467_v10 }
 0x167   : > { %1660 = vst.msk [vmem:[%s2553_s30 + $0x3f8] sm:$0xff] %vm1532_vm4, %v1531_v11  ;;  %1595 = vst.msk [vmem:[%s2553_s30 + $0x1f0] sm:$0xff] %vm1532_vm4, %v1466_v12 }
 0x168   : > { %1659 = vst.msk [vmem:[%s2553_s30 + $0x3f0] sm:$0xff] %vm1532_vm4, %v1530_v13 }
 0x169 PF: > { %s13_s12 = sadd.s32 1, %s2220_s12  }
 0x16a   : > { %p10_p4 = scmp.ge.s32.totalorder %s13_s12, 4  }
 0x16c   :  { %12 = sbr.rel (!%p10_p4) target bundleno = 1 (0x1), region = 62 }

</bundles_post_ra>
